<compile_context>
chip_gen: v7x
topology: tpu7x:2x2x1
jax: 0.10.0
libtpu: 0.0.40
codegen_flags: <defaults>
</compile_context>

<pallas_src>
import numpy as np
import jax
import jax.numpy as jnp
from jax import lax
from jax.experimental import pallas as pl
from jax.experimental.pallas import tpu as pltpu


def _round_up(x, m):
    return (x + m - 1) // m * m


def _pad_gate_cols(w, H, H_pad):
    """(..., 3H) -> (..., 3*H_pad): zero-pad each gate block to H_pad lanes."""
    parts = []
    for g in range(3):
        blk = w[..., g * H:(g + 1) * H]
        pad = [(0, 0)] * (w.ndim - 1) + [(0, H_pad - H)]
        parts.append(jnp.pad(blk, pad))
    return jnp.concatenate(parts, axis=-1)


# ----------------------------------------------------------------------------
# Fused Pallas kernel: all GRU layers + classifier, time-chunked grid.
# ----------------------------------------------------------------------------
def _make_fused_gru_kernel(n_layers, Tc, Bs, E_pad, H_pad):
    H3 = 3 * H_pad

    def kernel(*refs):
        # inputs
        x_ref, h0_ref = refs[0], refs[1]           # (Tc,Bs,E_pad), (L,Bs,H_pad)
        p = 2
        layer_refs = []
        for _ in range(n_layers):
            layer_refs.append(refs[p:p + 4])       # w_ih, w_hh, b_ih, b_hh
            p += 4
        wfc_ref, bfc_ref = refs[p], refs[p + 1]    # (H_pad,C_pad), (1,C_pad)
        p += 2
        # outputs
        out_ref, hid_ref = refs[p], refs[p + 1]    # (Bs,C_pad), (L,Bs,H_pad)
        p += 2
        # scratch (persists across grid steps)
        hcarry, hseq, xproj = refs[p], refs[p + 1], refs[p + 2]

        c = pl.program_id(1)                       # time-chunk index (serial)

        # Initialize per-layer hidden carry from h0 at the first chunk.
        @pl.when(c == 0)
        def _():
            hcarry[...] = h0_ref[...]

        # Chunk input, flattened time-major: row t*Bs + b.
        layer_in = x_ref[...].reshape(Tc * Bs, E_pad)

        h_last = None
        for layer in range(n_layers):
            w_ih, w_hh, b_ih, b_hh = layer_refs[layer]

            # Hoisted input projection for the whole chunk (one MXU matmul).
            xproj[...] = (
                jnp.dot(layer_in, w_ih[...], preferred_element_type=jnp.float32)
                + b_ih[...])

            # Loop-invariant loads / broadcast hoisted out of the time loop.
            w_hh_v = w_hh[...]                                   # (H_pad, 3H_pad)
            b_hh_v = jnp.broadcast_to(b_hh[...], (Bs, H3))       # (Bs, 3H_pad)
            h_init = hcarry[layer]                               # (Bs, H_pad)
            last_layer = (layer + 1 == n_layers)

            def step(t, h_prev, _w=w_hh_v, _b=b_hh_v, _last=last_layer):
                row = pl.multiple_of(t * Bs, Bs)
                xp = xproj[pl.ds(row, Bs), :]                    # (Bs, 3H_pad)
                hp = (jnp.dot(h_prev, _w,
                              preferred_element_type=jnp.float32) + _b)
                # PyTorch GRU gate order: r, z, n (separate b_hh on n gate).
                # All gate slices are 128-lane aligned (H_pad multiple of 128).
                r = jax.nn.sigmoid(xp[:, 0:H_pad] + hp[:, 0:H_pad])
                z = jax.nn.sigmoid(xp[:, H_pad:2 * H_pad]
                                   + hp[:, H_pad:2 * H_pad])
                n = jnp.tanh(xp[:, 2 * H_pad:H3] + r * hp[:, 2 * H_pad:H3])
                h_new = (1.0 - z) * n + z * h_prev
                if not _last:                     # last layer: only h_last needed
                    hseq[pl.ds(row, Bs), :] = h_new
                return h_new

            h_last = lax.fori_loop(0, Tc, step, h_init, unroll=min(Tc, 8))
            hcarry[layer] = h_last

            if not last_layer:
                # Data dependence hseq-load -> xproj-store -> step keeps the
                # next layer's rewrite of hseq ordered after this read.
                layer_in = hseq[...]              # (Tc*Bs, H_pad)

        # Finalize at the last chunk: h_n and classifier on gru_out[:, -1].
        @pl.when(c == pl.num_programs(1) - 1)
        def _():
            hid_ref[...] = hcarry[...]
            logits = (jnp.dot(h_last, wfc_ref[...],
                              preferred_element_type=jnp.float32)
                      + bfc_ref[...])             # (Bs, C_pad) lane-dense
            out_ref[...] = logits.astype(out_ref.dtype)

    return kernel


# ----------------------------------------------------------------------------
# Wrapper: embedding gather, padding, single pallas_call.
# ----------------------------------------------------------------------------
def gru_classifier_forward(params, x_ids, hidden, *, time_chunk=64):
    """x_ids: (B, T) int32 token ids; hidden: (n_layers, B, H) initial h0."""
    B, T = x_ids.shape
    emb = params["emb"]
    E = emb.shape[1]
    layers = params["layers"]
    n_layers = len(layers)
    H = layers[0][1].shape[0]            # w_hh: (H, 3H)
    C = params["w_fc"].shape[1]

    H_pad = _round_up(H, 128)            # per-gate lane alignment
    E_pad = _round_up(E, 128)
    C_pad = _round_up(C, 128)
    B_pad = _round_up(B, 8)

    # v7x megacore: shard padded batch across 2 TCs when there is enough of it.
    nB = 2 if (B_pad >= 16 and B_pad % 16 == 0) else 1
    Bs = B_pad // nB

    # Time chunk must divide T exactly (zero time-padding would corrupt h).
    Tc = min(T, max(1, time_chunk))
    while T % Tc:
        Tc -= 1
    nC = T // Tc

    # Embedding lookup: transpose the int32 ids, gather time-major directly.
    x_tbe = jnp.take(emb, x_ids.T, axis=0)                     # (T, B, E)
    x_tbe = jnp.pad(x_tbe, ((0, 0), (0, B_pad - B), (0, E_pad - E)))

    h0 = jnp.pad(hidden, ((0, 0), (0, B_pad - B), (0, H_pad - H)))

    # Pad weights: gate blocks to H_pad lanes, zero rows/cols elsewhere.
    padded_layers = []
    for li, (w_ih, w_hh, b_ih, b_hh) in enumerate(layers):
        d_in = E if li == 0 else H
        d_in_pad = E_pad if li == 0 else H_pad
        w_ih_p = jnp.pad(_pad_gate_cols(w_ih, H, H_pad),
                         ((0, d_in_pad - d_in), (0, 0)))
        w_hh_p = jnp.pad(_pad_gate_cols(w_hh, H, H_pad),
                         ((0, H_pad - H), (0, 0)))
        b_ih_p = _pad_gate_cols(b_ih, H, H_pad)
        b_hh_p = _pad_gate_cols(b_hh, H, H_pad)
        padded_layers.append((w_ih_p, w_hh_p, b_ih_p, b_hh_p))

    w_fc_p = jnp.pad(params["w_fc"], ((0, H_pad - H), (0, C_pad - C)))
    b_fc_p = jnp.pad(params["b_fc"], ((0, 0), (0, C_pad - C)))

    inputs = [x_tbe, h0]
    for tup in padded_layers:
        inputs += list(tup)
    inputs += [w_fc_p, b_fc_p]

    def _const_spec(a):
        nd = a.ndim
        return pl.BlockSpec(a.shape, lambda b, c, _nd=nd: (0,) * _nd)

    in_specs = [
        pl.BlockSpec((Tc, Bs, E_pad), lambda b, c: (c, b, 0)),          # x chunk
        pl.BlockSpec((n_layers, Bs, H_pad), lambda b, c: (0, b, 0)),    # h0
    ] + [_const_spec(a) for a in inputs[2:]]                            # weights

    out_specs = [
        pl.BlockSpec((Bs, C_pad), lambda b, c: (b, 0)),                 # logits
        pl.BlockSpec((n_layers, Bs, H_pad), lambda b, c: (0, b, 0)),    # h_n
    ]

    grid_spec = pltpu.PrefetchScalarGridSpec(
        num_scalar_prefetch=0,
        grid=(nB, nC),
        in_specs=in_specs,
        out_specs=out_specs,
        scratch_shapes=[
            pltpu.VMEM((n_layers, Bs, H_pad), jnp.float32),    # per-layer h carry
            pltpu.VMEM((Tc * Bs, H_pad), jnp.float32),         # inter-layer chunk
            pltpu.VMEM((Tc * Bs, 3 * H_pad), jnp.float32),     # hoisted projection
        ],
    )

    kernel = _make_fused_gru_kernel(n_layers, Tc, Bs, E_pad, H_pad)

    out_p, hid_p = pl.pallas_call(
        kernel,
        out_shape=(
            jax.ShapeDtypeStruct((B_pad, C_pad), jnp.float32),
            jax.ShapeDtypeStruct((n_layers, B_pad, H_pad), jnp.float32),
        ),
        grid_spec=grid_spec,
        compiler_params=pltpu.CompilerParams(
            dimension_semantics=("parallel", "arbitrary")),
    )(*inputs)

    return out_p[:B, :C], hid_p[:, :B, :H]


# ----------------------------------------------------------------------------
# Parameter setup (PyTorch-style init; GRU weights stored pre-transposed (D, 3H))
# ----------------------------------------------------------------------------
def init_params(key, vocab_size, embedding_dim, hidden_dim, n_layers, n_classes):
    keys = jax.random.split(key, 1 + 4 * n_layers + 2)
    k = 0

    # Embedding ~ N(0,1), row 0 zeroed (padding_idx=0)
    emb = jax.random.normal(keys[k], (vocab_size, embedding_dim),
                            dtype=jnp.float32); k += 1
    emb = emb.at[0].set(0.0)

    bound = 1.0 / np.sqrt(hidden_dim)
    layers = []
    for layer in range(n_layers):
        d_in = embedding_dim if layer == 0 else hidden_dim
        w_ih = jax.random.uniform(keys[k], (d_in, 3 * hidden_dim),
                                  minval=-bound, maxval=bound,
                                  dtype=jnp.float32); k += 1
        w_hh = jax.random.uniform(keys[k], (hidden_dim, 3 * hidden_dim),
                                  minval=-bound, maxval=bound,
                                  dtype=jnp.float32); k += 1
        b_ih = jax.random.uniform(keys[k], (1, 3 * hidden_dim),
                                  minval=-bound, maxval=bound,
                                  dtype=jnp.float32); k += 1
        b_hh = jax.random.uniform(keys[k], (1, 3 * hidden_dim),
                                  minval=-bound, maxval=bound,
                                  dtype=jnp.float32); k += 1
        layers.append((w_ih, w_hh, b_ih, b_hh))

    cbound = 1.0 / np.sqrt(hidden_dim)
    w_fc = jax.random.uniform(keys[k], (hidden_dim, n_classes),
                              minval=-cbound, maxval=cbound,
                              dtype=jnp.float32); k += 1
    b_fc = jax.random.uniform(keys[k], (1, n_classes),
                              minval=-cbound, maxval=cbound,
                              dtype=jnp.float32); k += 1

    return {"emb": emb, "layers": layers, "w_fc": w_fc, "b_fc": b_fc}


# ----------------------------------------------------------------------------
# Pure-JAX reference (correctness check)
# ----------------------------------------------------------------------------
def reference_forward(params, x_ids, h0_all):
    embeds = jnp.take(params["emb"], x_ids, axis=0)       # (B, T, E)
    layer_in = jnp.transpose(embeds, (1, 0, 2))           # (T, B, E)
    H = params["layers"][0][1].shape[0]
    h_finals = []
    for layer, (w_ih, w_hh, b_ih, b_hh) in enumerate(params["layers"]):
        def step(h, x_t):
            xp = x_t @ w_ih + b_ih[0]
            hp = h @ w_hh + b_hh[0]
            r = jax.nn.sigmoid(xp[:, 0:H] + hp[:, 0:H])
            z = jax.nn.sigmoid(xp[:, H:2 * H] + hp[:, H:2 * H])
            n = jnp.tanh(xp[:, 2 * H:3 * H] + r * hp[:, 2 * H:3 * H])
            h_new = (1.0 - z) * n + z * h
            return h_new, h_new
        h_n, h_seq = lax.scan(step, h0_all[layer], layer_in)
        h_finals.append(h_n)
        layer_in = h_seq
    out = layer_in[-1] @ params["w_fc"] + params["b_fc"][0]
    return out, jnp.stack(h_finals, 0)


if __name__ == "__main__":
    # Small shapes consistent with the module.
    vocab_size, embedding_dim, hidden_dim = 50, 16, 32
    n_layers, n_classes = 2, 5
    batch_size, seq_len = 2, 8

    key = jax.random.PRNGKey(0)
    pkey, xkey = jax.random.split(key)
    params = init_params(pkey, vocab_size, embedding_dim, hidden_dim,
                         n_layers, n_classes)

    x_ids = jax.random.randint(xkey, (batch_size, seq_len), 0, vocab_size,
                               dtype=jnp.int32)
    # init_hidden(batch_size, device): zeros, shape (n_layers*directions, B, H)
    h0 = jnp.zeros((n_layers, batch_size, hidden_dim), jnp.float32)

    # time_chunk=4 -> 2 time chunks: exercises the chunked-carry grid path.
    out, hidden = gru_classifier_forward(params, x_ids, h0, time_chunk=4)
    jax.block_until_ready(out)
    jax.block_until_ready(hidden)

    out_ref, hid_ref = reference_forward(params, x_ids, h0)
    np.testing.assert_allclose(np.asarray(out), np.asarray(out_ref),
                               rtol=1e-4, atol=1e-5)
    np.testing.assert_allclose(np.asarray(hidden), np.asarray(hid_ref),
                               rtol=1e-4, atol=1e-5)

    print("KERNEL_OK")
</pallas_src>

<mosaic_0001>
module attributes {stable_mosaic.version = 11 : i64} {
  func.func @kernel(%arg0: i32, %arg1: i32, %arg2: memref<4x8x128xf32, #tpu.memory_space<vmem>>, %arg3: memref<2x8x128xf32, #tpu.memory_space<vmem>>, %arg4: memref<128x384xf32, #tpu.memory_space<vmem>>, %arg5: memref<128x384xf32, #tpu.memory_space<vmem>>, %arg6: memref<1x384xf32, #tpu.memory_space<vmem>>, %arg7: memref<1x384xf32, #tpu.memory_space<vmem>>, %arg8: memref<128x384xf32, #tpu.memory_space<vmem>>, %arg9: memref<128x384xf32, #tpu.memory_space<vmem>>, %arg10: memref<1x384xf32, #tpu.memory_space<vmem>>, %arg11: memref<1x384xf32, #tpu.memory_space<vmem>>, %arg12: memref<128x128xf32, #tpu.memory_space<vmem>>, %arg13: memref<1x128xf32, #tpu.memory_space<vmem>>, %arg14: memref<8x128xf32, #tpu.memory_space<vmem>>, %arg15: memref<2x8x128xf32, #tpu.memory_space<vmem>>, %arg16: memref<2x8x128xf32, #tpu.memory_space<vmem>>, %arg17: memref<32x128xf32, #tpu.memory_space<vmem>>, %arg18: memref<32x384xf32, #tpu.memory_space<vmem>>) attributes {dimension_semantics = [#tpu.dimension_semantics<parallel>, #tpu.dimension_semantics<arbitrary>], iteration_bounds = array<i64: 1, 2>, scalar_prefetch = 0 : i64, scratch_operands = 3 : i64, tpu.core_type = #tpu.core_type<tc>, window_params = [{transform_indices = @transform_0, window_bounds = array<i64: 4, 8, 128>}, {transform_indices = @transform_1, window_bounds = array<i64: 2, 8, 128>}, {pipeline_mode = #tpu.pipeline_mode<synchronous>, transform_indices = @transform_2, window_bounds = array<i64: 128, 384>}, {pipeline_mode = #tpu.pipeline_mode<synchronous>, transform_indices = @transform_3, window_bounds = array<i64: 128, 384>}, {pipeline_mode = #tpu.pipeline_mode<synchronous>, transform_indices = @transform_4, window_bounds = array<i64: 1, 384>}, {pipeline_mode = #tpu.pipeline_mode<synchronous>, transform_indices = @transform_5, window_bounds = array<i64: 1, 384>}, {pipeline_mode = #tpu.pipeline_mode<synchronous>, transform_indices = @transform_6, window_bounds = array<i64: 128, 384>}, {pipeline_mode = #tpu.pipeline_mode<synchronous>, transform_indices = @transform_7, window_bounds = array<i64: 128, 384>}, {pipeline_mode = #tpu.pipeline_mode<synchronous>, transform_indices = @transform_8, window_bounds = array<i64: 1, 384>}, {pipeline_mode = #tpu.pipeline_mode<synchronous>, transform_indices = @transform_9, window_bounds = array<i64: 1, 384>}, {pipeline_mode = #tpu.pipeline_mode<synchronous>, transform_indices = @transform_10, window_bounds = array<i64: 128, 128>}, {pipeline_mode = #tpu.pipeline_mode<synchronous>, transform_indices = @transform_11, window_bounds = array<i64: 1, 128>}, {transform_indices = @transform_12, window_bounds = array<i64: 8, 128>}, {transform_indices = @transform_13, window_bounds = array<i64: 2, 8, 128>}]} {
    %c0_i32 = arith.constant 0 : i32
    %0 = arith.cmpi eq, %arg1, %c0_i32 : i32
    %1 = arith.extui %0 : i1 to i32
    %c0_i32_0 = arith.constant 0 : i32
    %2 = arith.cmpi ne, %1, %c0_i32_0 : i32
    scf.if %2 {
      %c0_96 = arith.constant 0 : index
      %c0_97 = arith.constant 0 : index
      %c0_98 = arith.constant 0 : index
      %303 = vector.load %arg3[%c0_96, %c0_97, %c0_98] : memref<2x8x128xf32, #tpu.memory_space<vmem>>, vector<2x8x128xf32>
      %c0_99 = arith.constant 0 : index
      %c0_100 = arith.constant 0 : index
      %c0_101 = arith.constant 0 : index
      %304 = vector.load %arg16[%c0_99, %c0_100, %c0_101] : memref<2x8x128xf32, #tpu.memory_space<vmem>>, vector<2x8x128xf32>
      tpu.vector_store %arg16[%c0_99, %c0_100, %c0_101], %303 {strides = array<i32>} : memref<2x8x128xf32, #tpu.memory_space<vmem>>, vector<2x8x128xf32>,
    } else {
    }
    %c0 = arith.constant 0 : index
    %c0_1 = arith.constant 0 : index
    %c0_2 = arith.constant 0 : index
    %3 = vector.load %arg2[%c0, %c0_1, %c0_2] : memref<4x8x128xf32, #tpu.memory_space<vmem>>, vector<4x8x128xf32>
    %4 = vector.shape_cast %3 : vector<4x8x128xf32> to vector<32x128xf32>
    %c0_3 = arith.constant 0 : index
    %c0_4 = arith.constant 0 : index
    %5 = vector.load %arg4[%c0_3, %c0_4] : memref<128x384xf32, #tpu.memory_space<vmem>>, vector<128x384xf32>
    %cst = arith.constant dense<0.000000e+00> : vector<32x384xf32>
    %6 = tpu.matmul %4, %5, %cst {dimension_numbers = #tpu.dot_dimension_numbers<[1], [0], [0], [1], [0, 0, 1, 1], [], []>} : vector<32x128xf32>, vector<128x384xf32>, vector<32x384xf32> -> vector<32x384xf32>
    %c0_5 = arith.constant 0 : index
    %c0_6 = arith.constant 0 : index
    %7 = vector.load %arg6[%c0_5, %c0_6] : memref<1x384xf32, #tpu.memory_space<vmem>>, vector<1x384xf32>
    %8 = vector.broadcast %7 : vector<1x384xf32> to vector<32x384xf32>
    %9 = arith.addf %6, %8 : vector<32x384xf32>
    %c0_7 = arith.constant 0 : index
    %c0_8 = arith.constant 0 : index
    %10 = vector.load %arg18[%c0_7, %c0_8] : memref<32x384xf32, #tpu.memory_space<vmem>>, vector<32x384xf32>
    tpu.vector_store %arg18[%c0_7, %c0_8], %9 {strides = array<i32>} : memref<32x384xf32, #tpu.memory_space<vmem>>, vector<32x384xf32>,
    %c0_9 = arith.constant 0 : index
    %c0_10 = arith.constant 0 : index
    %11 = vector.load %arg5[%c0_9, %c0_10] : memref<128x384xf32, #tpu.memory_space<vmem>>, vector<128x384xf32>
    %c0_11 = arith.constant 0 : index
    %c0_12 = arith.constant 0 : index
    %12 = vector.load %arg7[%c0_11, %c0_12] : memref<1x384xf32, #tpu.memory_space<vmem>>, vector<1x384xf32>
    %13 = vector.shape_cast %12 : vector<1x384xf32> to vector<1x384xf32>
    %14 = vector.broadcast %13 : vector<1x384xf32> to vector<8x384xf32>
    %c0_13 = arith.constant 0 : index
    %c0_14 = arith.constant 0 : index
    %c0_15 = arith.constant 0 : index
    %15 = vector.load %arg16[%c0_13, %c0_14, %c0_15] : memref<2x8x128xf32, #tpu.memory_space<vmem>>, vector<1x8x128xf32>
    %16 = vector.shape_cast %15 : vector<1x8x128xf32> to vector<8x128xf32>
    %c0_i32_16 = arith.constant 0 : i32
    %c8_i32 = arith.constant 8 : i32
    %17 = arith.muli %c0_i32_16, %c8_i32 : i32
    %18 = tpu.assume_multiple %17, 8 : i32
    %19 = arith.index_cast %18 : i32 to index
    %c0_17 = arith.constant 0 : index
    %20 = vector.load %arg18[%19, %c0_17] : memref<32x384xf32, #tpu.memory_space<vmem>>, vector<8x384xf32>
    %cst_18 = arith.constant dense<0.000000e+00> : vector<8x384xf32>
    %21 = tpu.matmul %16, %11, %cst_18 {dimension_numbers = #tpu.dot_dimension_numbers<[1], [0], [0], [1], [0, 0, 1, 1], [], []>} : vector<8x128xf32>, vector<128x384xf32>, vector<8x384xf32> -> vector<8x384xf32>
    %22 = arith.addf %21, %14 : vector<8x384xf32>
    %23 = vector.extract_strided_slice %20 {offsets = [0, 0], sizes = [8, 128], strides = [1, 1]} : vector<8x384xf32> to vector<8x128xf32>
    %24 = vector.extract_strided_slice %22 {offsets = [0, 0], sizes = [8, 128], strides = [1, 1]} : vector<8x384xf32> to vector<8x128xf32>
    %25 = arith.addf %23, %24 : vector<8x128xf32>
    %26 = arith.negf %25 : vector<8x128xf32>
    %27 = math.exp %26 : vector<8x128xf32>
    %cst_19 = arith.constant 1.000000e+00 : f32
    %28 = vector.broadcast %cst_19 : f32 to vector<8x128xf32>
    %29 = arith.addf %28, %27 : vector<8x128xf32>
    %30 = arith.divf %28, %29 : vector<8x128xf32>
    %31 = vector.extract_strided_slice %20 {offsets = [0, 128], sizes = [8, 128], strides = [1, 1]} : vector<8x384xf32> to vector<8x128xf32>
    %32 = vector.extract_strided_slice %22 {offsets = [0, 128], sizes = [8, 128], strides = [1, 1]} : vector<8x384xf32> to vector<8x128xf32>
    %33 = arith.addf %31, %32 : vector<8x128xf32>
    %34 = arith.negf %33 : vector<8x128xf32>
    %35 = math.exp %34 : vector<8x128xf32>
    %cst_20 = arith.constant 1.000000e+00 : f32
    %36 = vector.broadcast %cst_20 : f32 to vector<8x128xf32>
    %37 = arith.addf %36, %35 : vector<8x128xf32>
    %38 = arith.divf %36, %37 : vector<8x128xf32>
    %39 = vector.extract_strided_slice %20 {offsets = [0, 256], sizes = [8, 128], strides = [1, 1]} : vector<8x384xf32> to vector<8x128xf32>
    %40 = vector.extract_strided_slice %22 {offsets = [0, 256], sizes = [8, 128], strides = [1, 1]} : vector<8x384xf32> to vector<8x128xf32>
    %41 = arith.mulf %30, %40 : vector<8x128xf32>
    %42 = arith.addf %39, %41 : vector<8x128xf32>
    %43 = math.tanh %42 : vector<8x128xf32>
    %cst_21 = arith.constant 1.000000e+00 : f32
    %44 = vector.broadcast %cst_21 : f32 to vector<8x128xf32>
    %45 = arith.subf %44, %38 : vector<8x128xf32>
    %46 = arith.mulf %45, %43 : vector<8x128xf32>
    %47 = arith.mulf %38, %16 : vector<8x128xf32>
    %48 = arith.addf %46, %47 : vector<8x128xf32>
    %49 = arith.index_cast %18 : i32 to index
    %c0_22 = arith.constant 0 : index
    %50 = vector.load %arg17[%49, %c0_22] : memref<32x128xf32, #tpu.memory_space<vmem>>, vector<8x128xf32>
    tpu.vector_store %arg17[%49, %c0_22], %48 {strides = array<i32>} : memref<32x128xf32, #tpu.memory_space<vmem>>, vector<8x128xf32>,
    %c1_i32 = arith.constant 1 : i32
    %c8_i32_23 = arith.constant 8 : i32
    %51 = arith.muli %c1_i32, %c8_i32_23 : i32
    %52 = tpu.assume_multiple %51, 8 : i32
    %53 = arith.index_cast %52 : i32 to index
    %c0_24 = arith.constant 0 : index
    %54 = vector.load %arg18[%53, %c0_24] : memref<32x384xf32, #tpu.memory_space<vmem>>, vector<8x384xf32>
    %cst_25 = arith.constant dense<0.000000e+00> : vector<8x384xf32>
    %55 = tpu.matmul %48, %11, %cst_25 {dimension_numbers = #tpu.dot_dimension_numbers<[1], [0], [0], [1], [0, 0, 1, 1], [], []>} : vector<8x128xf32>, vector<128x384xf32>, vector<8x384xf32> -> vector<8x384xf32>
    %56 = arith.addf %55, %14 : vector<8x384xf32>
    %57 = vector.extract_strided_slice %54 {offsets = [0, 0], sizes = [8, 128], strides = [1, 1]} : vector<8x384xf32> to vector<8x128xf32>
    %58 = vector.extract_strided_slice %56 {offsets = [0, 0], sizes = [8, 128], strides = [1, 1]} : vector<8x384xf32> to vector<8x128xf32>
    %59 = arith.addf %57, %58 : vector<8x128xf32>
    %60 = arith.negf %59 : vector<8x128xf32>
    %61 = math.exp %60 : vector<8x128xf32>
    %cst_26 = arith.constant 1.000000e+00 : f32
    %62 = vector.broadcast %cst_26 : f32 to vector<8x128xf32>
    %63 = arith.addf %62, %61 : vector<8x128xf32>
    %64 = arith.divf %62, %63 : vector<8x128xf32>
    %65 = vector.extract_strided_slice %54 {offsets = [0, 128], sizes = [8, 128], strides = [1, 1]} : vector<8x384xf32> to vector<8x128xf32>
    %66 = vector.extract_strided_slice %56 {offsets = [0, 128], sizes = [8, 128], strides = [1, 1]} : vector<8x384xf32> to vector<8x128xf32>
    %67 = arith.addf %65, %66 : vector<8x128xf32>
    %68 = arith.negf %67 : vector<8x128xf32>
    %69 = math.exp %68 : vector<8x128xf32>
    %cst_27 = arith.constant 1.000000e+00 : f32
    %70 = vector.broadcast %cst_27 : f32 to vector<8x128xf32>
    %71 = arith.addf %70, %69 : vector<8x128xf32>
    %72 = arith.divf %70, %71 : vector<8x128xf32>
    %73 = vector.extract_strided_slice %54 {offsets = [0, 256], sizes = [8, 128], strides = [1, 1]} : vector<8x384xf32> to vector<8x128xf32>
    %74 = vector.extract_strided_slice %56 {offsets = [0, 256], sizes = [8, 128], strides = [1, 1]} : vector<8x384xf32> to vector<8x128xf32>
    %75 = arith.mulf %64, %74 : vector<8x128xf32>
    %76 = arith.addf %73, %75 : vector<8x128xf32>
    %77 = math.tanh %76 : vector<8x128xf32>
    %cst_28 = arith.constant 1.000000e+00 : f32
    %78 = vector.broadcast %cst_28 : f32 to vector<8x128xf32>
    %79 = arith.subf %78, %72 : vector<8x128xf32>
    %80 = arith.mulf %79, %77 : vector<8x128xf32>
    %81 = arith.mulf %72, %48 : vector<8x128xf32>
    %82 = arith.addf %80, %81 : vector<8x128xf32>
    %83 = arith.index_cast %52 : i32 to index
    %c0_29 = arith.constant 0 : index
    %84 = vector.load %arg17[%83, %c0_29] : memref<32x128xf32, #tpu.memory_space<vmem>>, vector<8x128xf32>
    tpu.vector_store %arg17[%83, %c0_29], %82 {strides = array<i32>} : memref<32x128xf32, #tpu.memory_space<vmem>>, vector<8x128xf32>,
    %c2_i32 = arith.constant 2 : i32
    %c8_i32_30 = arith.constant 8 : i32
    %85 = arith.muli %c2_i32, %c8_i32_30 : i32
    %86 = tpu.assume_multiple %85, 8 : i32
    %87 = arith.index_cast %86 : i32 to index
    %c0_31 = arith.constant 0 : index
    %88 = vector.load %arg18[%87, %c0_31] : memref<32x384xf32, #tpu.memory_space<vmem>>, vector<8x384xf32>
    %cst_32 = arith.constant dense<0.000000e+00> : vector<8x384xf32>
    %89 = tpu.matmul %82, %11, %cst_32 {dimension_numbers = #tpu.dot_dimension_numbers<[1], [0], [0], [1], [0, 0, 1, 1], [], []>} : vector<8x128xf32>, vector<128x384xf32>, vector<8x384xf32> -> vector<8x384xf32>
    %90 = arith.addf %89, %14 : vector<8x384xf32>
    %91 = vector.extract_strided_slice %88 {offsets = [0, 0], sizes = [8, 128], strides = [1, 1]} : vector<8x384xf32> to vector<8x128xf32>
    %92 = vector.extract_strided_slice %90 {offsets = [0, 0], sizes = [8, 128], strides = [1, 1]} : vector<8x384xf32> to vector<8x128xf32>
    %93 = arith.addf %91, %92 : vector<8x128xf32>
    %94 = arith.negf %93 : vector<8x128xf32>
    %95 = math.exp %94 : vector<8x128xf32>
    %cst_33 = arith.constant 1.000000e+00 : f32
    %96 = vector.broadcast %cst_33 : f32 to vector<8x128xf32>
    %97 = arith.addf %96, %95 : vector<8x128xf32>
    %98 = arith.divf %96, %97 : vector<8x128xf32>
    %99 = vector.extract_strided_slice %88 {offsets = [0, 128], sizes = [8, 128], strides = [1, 1]} : vector<8x384xf32> to vector<8x128xf32>
    %100 = vector.extract_strided_slice %90 {offsets = [0, 128], sizes = [8, 128], strides = [1, 1]} : vector<8x384xf32> to vector<8x128xf32>
    %101 = arith.addf %99, %100 : vector<8x128xf32>
    %102 = arith.negf %101 : vector<8x128xf32>
    %103 = math.exp %102 : vector<8x128xf32>
    %cst_34 = arith.constant 1.000000e+00 : f32
    %104 = vector.broadcast %cst_34 : f32 to vector<8x128xf32>
    %105 = arith.addf %104, %103 : vector<8x128xf32>
    %106 = arith.divf %104, %105 : vector<8x128xf32>
    %107 = vector.extract_strided_slice %88 {offsets = [0, 256], sizes = [8, 128], strides = [1, 1]} : vector<8x384xf32> to vector<8x128xf32>
    %108 = vector.extract_strided_slice %90 {offsets = [0, 256], sizes = [8, 128], strides = [1, 1]} : vector<8x384xf32> to vector<8x128xf32>
    %109 = arith.mulf %98, %108 : vector<8x128xf32>
    %110 = arith.addf %107, %109 : vector<8x128xf32>
    %111 = math.tanh %110 : vector<8x128xf32>
    %cst_35 = arith.constant 1.000000e+00 : f32
    %112 = vector.broadcast %cst_35 : f32 to vector<8x128xf32>
    %113 = arith.subf %112, %106 : vector<8x128xf32>
    %114 = arith.mulf %113, %111 : vector<8x128xf32>
    %115 = arith.mulf %106, %82 : vector<8x128xf32>
    %116 = arith.addf %114, %115 : vector<8x128xf32>
    %117 = arith.index_cast %86 : i32 to index
    %c0_36 = arith.constant 0 : index
    %118 = vector.load %arg17[%117, %c0_36] : memref<32x128xf32, #tpu.memory_space<vmem>>, vector<8x128xf32>
    tpu.vector_store %arg17[%117, %c0_36], %116 {strides = array<i32>} : memref<32x128xf32, #tpu.memory_space<vmem>>, vector<8x128xf32>,
    %c3_i32 = arith.constant 3 : i32
    %c8_i32_37 = arith.constant 8 : i32
    %119 = arith.muli %c3_i32, %c8_i32_37 : i32
    %120 = tpu.assume_multiple %119, 8 : i32
    %121 = arith.index_cast %120 : i32 to index
    %c0_38 = arith.constant 0 : index
    %122 = vector.load %arg18[%121, %c0_38] : memref<32x384xf32, #tpu.memory_space<vmem>>, vector<8x384xf32>
    %cst_39 = arith.constant dense<0.000000e+00> : vector<8x384xf32>
    %123 = tpu.matmul %116, %11, %cst_39 {dimension_numbers = #tpu.dot_dimension_numbers<[1], [0], [0], [1], [0, 0, 1, 1], [], []>} : vector<8x128xf32>, vector<128x384xf32>, vector<8x384xf32> -> vector<8x384xf32>
    %124 = arith.addf %123, %14 : vector<8x384xf32>
    %125 = vector.extract_strided_slice %122 {offsets = [0, 0], sizes = [8, 128], strides = [1, 1]} : vector<8x384xf32> to vector<8x128xf32>
    %126 = vector.extract_strided_slice %124 {offsets = [0, 0], sizes = [8, 128], strides = [1, 1]} : vector<8x384xf32> to vector<8x128xf32>
    %127 = arith.addf %125, %126 : vector<8x128xf32>
    %128 = arith.negf %127 : vector<8x128xf32>
    %129 = math.exp %128 : vector<8x128xf32>
    %cst_40 = arith.constant 1.000000e+00 : f32
    %130 = vector.broadcast %cst_40 : f32 to vector<8x128xf32>
    %131 = arith.addf %130, %129 : vector<8x128xf32>
    %132 = arith.divf %130, %131 : vector<8x128xf32>
    %133 = vector.extract_strided_slice %122 {offsets = [0, 128], sizes = [8, 128], strides = [1, 1]} : vector<8x384xf32> to vector<8x128xf32>
    %134 = vector.extract_strided_slice %124 {offsets = [0, 128], sizes = [8, 128], strides = [1, 1]} : vector<8x384xf32> to vector<8x128xf32>
    %135 = arith.addf %133, %134 : vector<8x128xf32>
    %136 = arith.negf %135 : vector<8x128xf32>
    %137 = math.exp %136 : vector<8x128xf32>
    %cst_41 = arith.constant 1.000000e+00 : f32
    %138 = vector.broadcast %cst_41 : f32 to vector<8x128xf32>
    %139 = arith.addf %138, %137 : vector<8x128xf32>
    %140 = arith.divf %138, %139 : vector<8x128xf32>
    %141 = vector.extract_strided_slice %122 {offsets = [0, 256], sizes = [8, 128], strides = [1, 1]} : vector<8x384xf32> to vector<8x128xf32>
    %142 = vector.extract_strided_slice %124 {offsets = [0, 256], sizes = [8, 128], strides = [1, 1]} : vector<8x384xf32> to vector<8x128xf32>
    %143 = arith.mulf %132, %142 : vector<8x128xf32>
    %144 = arith.addf %141, %143 : vector<8x128xf32>
    %145 = math.tanh %144 : vector<8x128xf32>
    %cst_42 = arith.constant 1.000000e+00 : f32
    %146 = vector.broadcast %cst_42 : f32 to vector<8x128xf32>
    %147 = arith.subf %146, %140 : vector<8x128xf32>
    %148 = arith.mulf %147, %145 : vector<8x128xf32>
    %149 = arith.mulf %140, %116 : vector<8x128xf32>
    %150 = arith.addf %148, %149 : vector<8x128xf32>
    %151 = arith.index_cast %120 : i32 to index
    %c0_43 = arith.constant 0 : index
    %152 = vector.load %arg17[%151, %c0_43] : memref<32x128xf32, #tpu.memory_space<vmem>>, vector<8x128xf32>
    tpu.vector_store %arg17[%151, %c0_43], %150 {strides = array<i32>} : memref<32x128xf32, #tpu.memory_space<vmem>>, vector<8x128xf32>,
    %c4_i32 = arith.constant 4 : i32
    %c0_44 = arith.constant 0 : index
    %c0_45 = arith.constant 0 : index
    %c0_46 = arith.constant 0 : index
    %153 = vector.load %arg16[%c0_44, %c0_45, %c0_46] : memref<2x8x128xf32, #tpu.memory_space<vmem>>, vector<1x8x128xf32>
    %154 = vector.shape_cast %153 : vector<1x8x128xf32> to vector<8x128xf32>
    %155 = vector.shape_cast %150 : vector<8x128xf32> to vector<1x8x128xf32>
    tpu.vector_store %arg16[%c0_44, %c0_45, %c0_46], %155 {strides = array<i32>} : memref<2x8x128xf32, #tpu.memory_space<vmem>>, vector<1x8x128xf32>,
    %c0_47 = arith.constant 0 : index
    %c0_48 = arith.constant 0 : index
    %156 = vector.load %arg17[%c0_47, %c0_48] : memref<32x128xf32, #tpu.memory_space<vmem>>, vector<32x128xf32>
    %c0_49 = arith.constant 0 : index
    %c0_50 = arith.constant 0 : index
    %157 = vector.load %arg8[%c0_49, %c0_50] : memref<128x384xf32, #tpu.memory_space<vmem>>, vector<128x384xf32>
    %cst_51 = arith.constant dense<0.000000e+00> : vector<32x384xf32>
    %158 = tpu.matmul %156, %157, %cst_51 {dimension_numbers = #tpu.dot_dimension_numbers<[1], [0], [0], [1], [0, 0, 1, 1], [], []>} : vector<32x128xf32>, vector<128x384xf32>, vector<32x384xf32> -> vector<32x384xf32>
    %c0_52 = arith.constant 0 : index
    %c0_53 = arith.constant 0 : index
    %159 = vector.load %arg10[%c0_52, %c0_53] : memref<1x384xf32, #tpu.memory_space<vmem>>, vector<1x384xf32>
    %160 = vector.broadcast %159 : vector<1x384xf32> to vector<32x384xf32>
    %161 = arith.addf %158, %160 : vector<32x384xf32>
    %c0_54 = arith.constant 0 : index
    %c0_55 = arith.constant 0 : index
    %162 = vector.load %arg18[%c0_54, %c0_55] : memref<32x384xf32, #tpu.memory_space<vmem>>, vector<32x384xf32>
    tpu.vector_store %arg18[%c0_54, %c0_55], %161 {strides = array<i32>} : memref<32x384xf32, #tpu.memory_space<vmem>>, vector<32x384xf32>,
    %c0_56 = arith.constant 0 : index
    %c0_57 = arith.constant 0 : index
    %163 = vector.load %arg9[%c0_56, %c0_57] : memref<128x384xf32, #tpu.memory_space<vmem>>, vector<128x384xf32>
    %c0_58 = arith.constant 0 : index
    %c0_59 = arith.constant 0 : index
    %164 = vector.load %arg11[%c0_58, %c0_59] : memref<1x384xf32, #tpu.memory_space<vmem>>, vector<1x384xf32>
    %165 = vector.shape_cast %164 : vector<1x384xf32> to vector<1x384xf32>
    %166 = vector.broadcast %165 : vector<1x384xf32> to vector<8x384xf32>
    %c1 = arith.constant 1 : index
    %c0_60 = arith.constant 0 : index
    %c0_61 = arith.constant 0 : index
    %167 = vector.load %arg16[%c1, %c0_60, %c0_61] : memref<2x8x128xf32, #tpu.memory_space<vmem>>, vector<1x8x128xf32>
    %168 = vector.shape_cast %167 : vector<1x8x128xf32> to vector<8x128xf32>
    %c0_i32_62 = arith.constant 0 : i32
    %c8_i32_63 = arith.constant 8 : i32
    %169 = arith.muli %c0_i32_62, %c8_i32_63 : i32
    %170 = tpu.assume_multiple %169, 8 : i32
    %171 = arith.index_cast %170 : i32 to index
    %c0_64 = arith.constant 0 : index
    %172 = vector.load %arg18[%171, %c0_64] : memref<32x384xf32, #tpu.memory_space<vmem>>, vector<8x384xf32>
    %cst_65 = arith.constant dense<0.000000e+00> : vector<8x384xf32>
    %173 = tpu.matmul %168, %163, %cst_65 {dimension_numbers = #tpu.dot_dimension_numbers<[1], [0], [0], [1], [0, 0, 1, 1], [], []>} : vector<8x128xf32>, vector<128x384xf32>, vector<8x384xf32> -> vector<8x384xf32>
    %174 = arith.addf %173, %166 : vector<8x384xf32>
    %175 = vector.extract_strided_slice %172 {offsets = [0, 0], sizes = [8, 128], strides = [1, 1]} : vector<8x384xf32> to vector<8x128xf32>
    %176 = vector.extract_strided_slice %174 {offsets = [0, 0], sizes = [8, 128], strides = [1, 1]} : vector<8x384xf32> to vector<8x128xf32>
    %177 = arith.addf %175, %176 : vector<8x128xf32>
    %178 = arith.negf %177 : vector<8x128xf32>
    %179 = math.exp %178 : vector<8x128xf32>
    %cst_66 = arith.constant 1.000000e+00 : f32
    %180 = vector.broadcast %cst_66 : f32 to vector<8x128xf32>
    %181 = arith.addf %180, %179 : vector<8x128xf32>
    %182 = arith.divf %180, %181 : vector<8x128xf32>
    %183 = vector.extract_strided_slice %172 {offsets = [0, 128], sizes = [8, 128], strides = [1, 1]} : vector<8x384xf32> to vector<8x128xf32>
    %184 = vector.extract_strided_slice %174 {offsets = [0, 128], sizes = [8, 128], strides = [1, 1]} : vector<8x384xf32> to vector<8x128xf32>
    %185 = arith.addf %183, %184 : vector<8x128xf32>
    %186 = arith.negf %185 : vector<8x128xf32>
    %187 = math.exp %186 : vector<8x128xf32>
    %cst_67 = arith.constant 1.000000e+00 : f32
    %188 = vector.broadcast %cst_67 : f32 to vector<8x128xf32>
    %189 = arith.addf %188, %187 : vector<8x128xf32>
    %190 = arith.divf %188, %189 : vector<8x128xf32>
    %191 = vector.extract_strided_slice %172 {offsets = [0, 256], sizes = [8, 128], strides = [1, 1]} : vector<8x384xf32> to vector<8x128xf32>
    %192 = vector.extract_strided_slice %174 {offsets = [0, 256], sizes = [8, 128], strides = [1, 1]} : vector<8x384xf32> to vector<8x128xf32>
    %193 = arith.mulf %182, %192 : vector<8x128xf32>
    %194 = arith.addf %191, %193 : vector<8x128xf32>
    %195 = math.tanh %194 : vector<8x128xf32>
    %cst_68 = arith.constant 1.000000e+00 : f32
    %196 = vector.broadcast %cst_68 : f32 to vector<8x128xf32>
    %197 = arith.subf %196, %190 : vector<8x128xf32>
    %198 = arith.mulf %197, %195 : vector<8x128xf32>
    %199 = arith.mulf %190, %168 : vector<8x128xf32>
    %200 = arith.addf %198, %199 : vector<8x128xf32>
    %c1_i32_69 = arith.constant 1 : i32
    %c8_i32_70 = arith.constant 8 : i32
    %201 = arith.muli %c1_i32_69, %c8_i32_70 : i32
    %202 = tpu.assume_multiple %201, 8 : i32
    %203 = arith.index_cast %202 : i32 to index
    %c0_71 = arith.constant 0 : index
    %204 = vector.load %arg18[%203, %c0_71] : memref<32x384xf32, #tpu.memory_space<vmem>>, vector<8x384xf32>
    %cst_72 = arith.constant dense<0.000000e+00> : vector<8x384xf32>
    %205 = tpu.matmul %200, %163, %cst_72 {dimension_numbers = #tpu.dot_dimension_numbers<[1], [0], [0], [1], [0, 0, 1, 1], [], []>} : vector<8x128xf32>, vector<128x384xf32>, vector<8x384xf32> -> vector<8x384xf32>
    %206 = arith.addf %205, %166 : vector<8x384xf32>
    %207 = vector.extract_strided_slice %204 {offsets = [0, 0], sizes = [8, 128], strides = [1, 1]} : vector<8x384xf32> to vector<8x128xf32>
    %208 = vector.extract_strided_slice %206 {offsets = [0, 0], sizes = [8, 128], strides = [1, 1]} : vector<8x384xf32> to vector<8x128xf32>
    %209 = arith.addf %207, %208 : vector<8x128xf32>
    %210 = arith.negf %209 : vector<8x128xf32>
    %211 = math.exp %210 : vector<8x128xf32>
    %cst_73 = arith.constant 1.000000e+00 : f32
    %212 = vector.broadcast %cst_73 : f32 to vector<8x128xf32>
    %213 = arith.addf %212, %211 : vector<8x128xf32>
    %214 = arith.divf %212, %213 : vector<8x128xf32>
    %215 = vector.extract_strided_slice %204 {offsets = [0, 128], sizes = [8, 128], strides = [1, 1]} : vector<8x384xf32> to vector<8x128xf32>
    %216 = vector.extract_strided_slice %206 {offsets = [0, 128], sizes = [8, 128], strides = [1, 1]} : vector<8x384xf32> to vector<8x128xf32>
    %217 = arith.addf %215, %216 : vector<8x128xf32>
    %218 = arith.negf %217 : vector<8x128xf32>
    %219 = math.exp %218 : vector<8x128xf32>
    %cst_74 = arith.constant 1.000000e+00 : f32
    %220 = vector.broadcast %cst_74 : f32 to vector<8x128xf32>
    %221 = arith.addf %220, %219 : vector<8x128xf32>
    %222 = arith.divf %220, %221 : vector<8x128xf32>
    %223 = vector.extract_strided_slice %204 {offsets = [0, 256], sizes = [8, 128], strides = [1, 1]} : vector<8x384xf32> to vector<8x128xf32>
    %224 = vector.extract_strided_slice %206 {offsets = [0, 256], sizes = [8, 128], strides = [1, 1]} : vector<8x384xf32> to vector<8x128xf32>
    %225 = arith.mulf %214, %224 : vector<8x128xf32>
    %226 = arith.addf %223, %225 : vector<8x128xf32>
    %227 = math.tanh %226 : vector<8x128xf32>
    %cst_75 = arith.constant 1.000000e+00 : f32
    %228 = vector.broadcast %cst_75 : f32 to vector<8x128xf32>
    %229 = arith.subf %228, %222 : vector<8x128xf32>
    %230 = arith.mulf %229, %227 : vector<8x128xf32>
    %231 = arith.mulf %222, %200 : vector<8x128xf32>
    %232 = arith.addf %230, %231 : vector<8x128xf32>
    %c2_i32_76 = arith.constant 2 : i32
    %c8_i32_77 = arith.constant 8 : i32
    %233 = arith.muli %c2_i32_76, %c8_i32_77 : i32
    %234 = tpu.assume_multiple %233, 8 : i32
    %235 = arith.index_cast %234 : i32 to index
    %c0_78 = arith.constant 0 : index
    %236 = vector.load %arg18[%235, %c0_78] : memref<32x384xf32, #tpu.memory_space<vmem>>, vector<8x384xf32>
    %cst_79 = arith.constant dense<0.000000e+00> : vector<8x384xf32>
    %237 = tpu.matmul %232, %163, %cst_79 {dimension_numbers = #tpu.dot_dimension_numbers<[1], [0], [0], [1], [0, 0, 1, 1], [], []>} : vector<8x128xf32>, vector<128x384xf32>, vector<8x384xf32> -> vector<8x384xf32>
    %238 = arith.addf %237, %166 : vector<8x384xf32>
    %239 = vector.extract_strided_slice %236 {offsets = [0, 0], sizes = [8, 128], strides = [1, 1]} : vector<8x384xf32> to vector<8x128xf32>
    %240 = vector.extract_strided_slice %238 {offsets = [0, 0], sizes = [8, 128], strides = [1, 1]} : vector<8x384xf32> to vector<8x128xf32>
    %241 = arith.addf %239, %240 : vector<8x128xf32>
    %242 = arith.negf %241 : vector<8x128xf32>
    %243 = math.exp %242 : vector<8x128xf32>
    %cst_80 = arith.constant 1.000000e+00 : f32
    %244 = vector.broadcast %cst_80 : f32 to vector<8x128xf32>
    %245 = arith.addf %244, %243 : vector<8x128xf32>
    %246 = arith.divf %244, %245 : vector<8x128xf32>
    %247 = vector.extract_strided_slice %236 {offsets = [0, 128], sizes = [8, 128], strides = [1, 1]} : vector<8x384xf32> to vector<8x128xf32>
    %248 = vector.extract_strided_slice %238 {offsets = [0, 128], sizes = [8, 128], strides = [1, 1]} : vector<8x384xf32> to vector<8x128xf32>
    %249 = arith.addf %247, %248 : vector<8x128xf32>
    %250 = arith.negf %249 : vector<8x128xf32>
    %251 = math.exp %250 : vector<8x128xf32>
    %cst_81 = arith.constant 1.000000e+00 : f32
    %252 = vector.broadcast %cst_81 : f32 to vector<8x128xf32>
    %253 = arith.addf %252, %251 : vector<8x128xf32>
    %254 = arith.divf %252, %253 : vector<8x128xf32>
    %255 = vector.extract_strided_slice %236 {offsets = [0, 256], sizes = [8, 128], strides = [1, 1]} : vector<8x384xf32> to vector<8x128xf32>
    %256 = vector.extract_strided_slice %238 {offsets = [0, 256], sizes = [8, 128], strides = [1, 1]} : vector<8x384xf32> to vector<8x128xf32>
    %257 = arith.mulf %246, %256 : vector<8x128xf32>
    %258 = arith.addf %255, %257 : vector<8x128xf32>
    %259 = math.tanh %258 : vector<8x128xf32>
    %cst_82 = arith.constant 1.000000e+00 : f32
    %260 = vector.broadcast %cst_82 : f32 to vector<8x128xf32>
    %261 = arith.subf %260, %254 : vector<8x128xf32>
    %262 = arith.mulf %261, %259 : vector<8x128xf32>
    %263 = arith.mulf %254, %232 : vector<8x128xf32>
    %264 = arith.addf %262, %263 : vector<8x128xf32>
    %c3_i32_83 = arith.constant 3 : i32
    %c8_i32_84 = arith.constant 8 : i32
    %265 = arith.muli %c3_i32_83, %c8_i32_84 : i32
    %266 = tpu.assume_multiple %265, 8 : i32
    %267 = arith.index_cast %266 : i32 to index
    %c0_85 = arith.constant 0 : index
    %268 = vector.load %arg18[%267, %c0_85] : memref<32x384xf32, #tpu.memory_space<vmem>>, vector<8x384xf32>
    %cst_86 = arith.constant dense<0.000000e+00> : vector<8x384xf32>
    %269 = tpu.matmul %264, %163, %cst_86 {dimension_numbers = #tpu.dot_dimension_numbers<[1], [0], [0], [1], [0, 0, 1, 1], [], []>} : vector<8x128xf32>, vector<128x384xf32>, vector<8x384xf32> -> vector<8x384xf32>
    %270 = arith.addf %269, %166 : vector<8x384xf32>
    %271 = vector.extract_strided_slice %268 {offsets = [0, 0], sizes = [8, 128], strides = [1, 1]} : vector<8x384xf32> to vector<8x128xf32>
    %272 = vector.extract_strided_slice %270 {offsets = [0, 0], sizes = [8, 128], strides = [1, 1]} : vector<8x384xf32> to vector<8x128xf32>
    %273 = arith.addf %271, %272 : vector<8x128xf32>
    %274 = arith.negf %273 : vector<8x128xf32>
    %275 = math.exp %274 : vector<8x128xf32>
    %cst_87 = arith.constant 1.000000e+00 : f32
    %276 = vector.broadcast %cst_87 : f32 to vector<8x128xf32>
    %277 = arith.addf %276, %275 : vector<8x128xf32>
    %278 = arith.divf %276, %277 : vector<8x128xf32>
    %279 = vector.extract_strided_slice %268 {offsets = [0, 128], sizes = [8, 128], strides = [1, 1]} : vector<8x384xf32> to vector<8x128xf32>
    %280 = vector.extract_strided_slice %270 {offsets = [0, 128], sizes = [8, 128], strides = [1, 1]} : vector<8x384xf32> to vector<8x128xf32>
    %281 = arith.addf %279, %280 : vector<8x128xf32>
    %282 = arith.negf %281 : vector<8x128xf32>
    %283 = math.exp %282 : vector<8x128xf32>
    %cst_88 = arith.constant 1.000000e+00 : f32
    %284 = vector.broadcast %cst_88 : f32 to vector<8x128xf32>
    %285 = arith.addf %284, %283 : vector<8x128xf32>
    %286 = arith.divf %284, %285 : vector<8x128xf32>
    %287 = vector.extract_strided_slice %268 {offsets = [0, 256], sizes = [8, 128], strides = [1, 1]} : vector<8x384xf32> to vector<8x128xf32>
    %288 = vector.extract_strided_slice %270 {offsets = [0, 256], sizes = [8, 128], strides = [1, 1]} : vector<8x384xf32> to vector<8x128xf32>
    %289 = arith.mulf %278, %288 : vector<8x128xf32>
    %290 = arith.addf %287, %289 : vector<8x128xf32>
    %291 = math.tanh %290 : vector<8x128xf32>
    %cst_89 = arith.constant 1.000000e+00 : f32
    %292 = vector.broadcast %cst_89 : f32 to vector<8x128xf32>
    %293 = arith.subf %292, %286 : vector<8x128xf32>
    %294 = arith.mulf %293, %291 : vector<8x128xf32>
    %295 = arith.mulf %286, %264 : vector<8x128xf32>
    %296 = arith.addf %294, %295 : vector<8x128xf32>
    %c4_i32_90 = arith.constant 4 : i32
    %c1_91 = arith.constant 1 : index
    %c0_92 = arith.constant 0 : index
    %c0_93 = arith.constant 0 : index
    %297 = vector.load %arg16[%c1_91, %c0_92, %c0_93] : memref<2x8x128xf32, #tpu.memory_space<vmem>>, vector<1x8x128xf32>
    %298 = vector.shape_cast %297 : vector<1x8x128xf32> to vector<8x128xf32>
    %299 = vector.shape_cast %296 : vector<8x128xf32> to vector<1x8x128xf32>
    tpu.vector_store %arg16[%c1_91, %c0_92, %c0_93], %299 {strides = array<i32>} : memref<2x8x128xf32, #tpu.memory_space<vmem>>, vector<1x8x128xf32>,
    %c1_i32_94 = arith.constant 1 : i32
    %300 = arith.cmpi eq, %arg1, %c1_i32_94 : i32
    %301 = arith.extui %300 : i1 to i32
    %c0_i32_95 = arith.constant 0 : i32
    %302 = arith.cmpi ne, %301, %c0_i32_95 : i32
    scf.if %302 {
      %c0_96 = arith.constant 0 : index
      %c0_97 = arith.constant 0 : index
      %c0_98 = arith.constant 0 : index
      %303 = vector.load %arg16[%c0_96, %c0_97, %c0_98] : memref<2x8x128xf32, #tpu.memory_space<vmem>>, vector<2x8x128xf32>
      %c0_99 = arith.constant 0 : index
      %c0_100 = arith.constant 0 : index
      %c0_101 = arith.constant 0 : index
      %304 = vector.load %arg15[%c0_99, %c0_100, %c0_101] : memref<2x8x128xf32, #tpu.memory_space<vmem>>, vector<2x8x128xf32>
      tpu.vector_store %arg15[%c0_99, %c0_100, %c0_101], %303 {strides = array<i32>} : memref<2x8x128xf32, #tpu.memory_space<vmem>>, vector<2x8x128xf32>,
      %c0_102 = arith.constant 0 : index
      %c0_103 = arith.constant 0 : index
      %305 = vector.load %arg12[%c0_102, %c0_103] : memref<128x128xf32, #tpu.memory_space<vmem>>, vector<128x128xf32>
      %cst_104 = arith.constant dense<0.000000e+00> : vector<8x128xf32>
      %306 = tpu.matmul %296, %305, %cst_104 {dimension_numbers = #tpu.dot_dimension_numbers<[1], [0], [0], [1], [0, 0, 1, 1], [], []>} : vector<8x128xf32>, vector<128x128xf32>, vector<8x128xf32> -> vector<8x128xf32>
      %c0_105 = arith.constant 0 : index
      %c0_106 = arith.constant 0 : index
      %307 = vector.load %arg13[%c0_105, %c0_106] : memref<1x128xf32, #tpu.memory_space<vmem>>, vector<1x128xf32>
      %308 = vector.broadcast %307 : vector<1x128xf32> to vector<8x128xf32>
      %309 = arith.addf %306, %308 : vector<8x128xf32>
      %c0_107 = arith.constant 0 : index
      %c0_108 = arith.constant 0 : index
      %310 = vector.load %arg14[%c0_107, %c0_108] : memref<8x128xf32, #tpu.memory_space<vmem>>, vector<8x128xf32>
      tpu.vector_store %arg14[%c0_107, %c0_108], %309 {strides = array<i32>} : memref<8x128xf32, #tpu.memory_space<vmem>>, vector<8x128xf32>,
    } else {
    }
    return
  }
  func.func @transform_0(%arg0: i32, %arg1: i32) -> (i32, i32, i32) {
    %c0_i32 = arith.constant 0 : i32
    %c0_i32_0 = arith.constant 0 : i32
    return %arg1, %arg0, %c0_i32 : i32, i32, i32
  }
  func.func @transform_1(%arg0: i32, %arg1: i32) -> (i32, i32, i32) {
    %c0_i32 = arith.constant 0 : i32
    %c0_i32_0 = arith.constant 0 : i32
    %c0_i32_1 = arith.constant 0 : i32
    return %c0_i32, %arg0, %c0_i32_0 : i32, i32, i32
  }
  func.func @transform_2(%arg0: i32, %arg1: i32) -> (i32, i32) {
    %c0_i32 = arith.constant 0 : i32
    %c0_i32_0 = arith.constant 0 : i32
    %c0_i32_1 = arith.constant 0 : i32
    return %c0_i32, %c0_i32_0 : i32, i32
  }
  func.func @transform_3(%arg0: i32, %arg1: i32) -> (i32, i32) {
    %c0_i32 = arith.constant 0 : i32
    %c0_i32_0 = arith.constant 0 : i32
    %c0_i32_1 = arith.constant 0 : i32
    return %c0_i32, %c0_i32_0 : i32, i32
  }
  func.func @transform_4(%arg0: i32, %arg1: i32) -> (i32, i32) {
    %c0_i32 = arith.constant 0 : i32
    %c0_i32_0 = arith.constant 0 : i32
    %c0_i32_1 = arith.constant 0 : i32
    return %c0_i32, %c0_i32_0 : i32, i32
  }
  func.func @transform_5(%arg0: i32, %arg1: i32) -> (i32, i32) {
    %c0_i32 = arith.constant 0 : i32
    %c0_i32_0 = arith.constant 0 : i32
    %c0_i32_1 = arith.constant 0 : i32
    return %c0_i32, %c0_i32_0 : i32, i32
  }
  func.func @transform_6(%arg0: i32, %arg1: i32) -> (i32, i32) {
    %c0_i32 = arith.constant 0 : i32
    %c0_i32_0 = arith.constant 0 : i32
    %c0_i32_1 = arith.constant 0 : i32
    return %c0_i32, %c0_i32_0 : i32, i32
  }
  func.func @transform_7(%arg0: i32, %arg1: i32) -> (i32, i32) {
    %c0_i32 = arith.constant 0 : i32
    %c0_i32_0 = arith.constant 0 : i32
    %c0_i32_1 = arith.constant 0 : i32
    return %c0_i32, %c0_i32_0 : i32, i32
  }
  func.func @transform_8(%arg0: i32, %arg1: i32) -> (i32, i32) {
    %c0_i32 = arith.constant 0 : i32
    %c0_i32_0 = arith.constant 0 : i32
    %c0_i32_1 = arith.constant 0 : i32
    return %c0_i32, %c0_i32_0 : i32, i32
  }
  func.func @transform_9(%arg0: i32, %arg1: i32) -> (i32, i32) {
    %c0_i32 = arith.constant 0 : i32
    %c0_i32_0 = arith.constant 0 : i32
    %c0_i32_1 = arith.constant 0 : i32
    return %c0_i32, %c0_i32_0 : i32, i32
  }
  func.func @transform_10(%arg0: i32, %arg1: i32) -> (i32, i32) {
    %c0_i32 = arith.constant 0 : i32
    %c0_i32_0 = arith.constant 0 : i32
    %c0_i32_1 = arith.constant 0 : i32
    return %c0_i32, %c0_i32_0 : i32, i32
  }
  func.func @transform_11(%arg0: i32, %arg1: i32) -> (i32, i32) {
    %c0_i32 = arith.constant 0 : i32
    %c0_i32_0 = arith.constant 0 : i32
    %c0_i32_1 = arith.constant 0 : i32
    return %c0_i32, %c0_i32_0 : i32, i32
  }
  func.func @transform_12(%arg0: i32, %arg1: i32) -> (i32, i32) {
    %c0_i32 = arith.constant 0 : i32
    %c0_i32_0 = arith.constant 0 : i32
    return %arg0, %c0_i32 : i32, i32
  }
  func.func @transform_13(%arg0: i32, %arg1: i32) -> (i32, i32, i32) {
    %c0_i32 = arith.constant 0 : i32
    %c0_i32_0 = arith.constant 0 : i32
    %c0_i32_1 = arith.constant 0 : i32
    return %c0_i32, %arg0, %c0_i32_0 : i32, i32, i32
  }
}

</mosaic_0001>

<bundles_post_ra>
// kernel: tpu_custom_call.1
= control target key start
LH: loop header
LB: loop body
LE: loop exit
PB: predicated region body
PF: predicated region fallthrough
CT: control target
= control target key end

     0   :  { %s5611_s0 = inlined_call_operand.hbm [shape: f32[8,8,128], index: 0, kind: input, shape index: {}]   ;;  %s5612_s1 = inlined_call_operand.hbm [shape: f32[2,8,128], index: 1, kind: input, shape index: {}]   ;;  %s5613_s2 = inlined_call_operand.hbm [shape: f32[128,384], index: 2, kind: input, shape index: {}]   ;;  %s5614_s3 = inlined_call_operand.hbm [shape: f32[128,384], index: 3, kind: input, shape index: {}]   ;;  %s5615_s4 = inlined_call_operand.vmem [shape: f32[1,384], index: 4, kind: input, shape index: {}]   ;;  %s5616_s5 = inlined_call_operand.vmem [shape: f32[1,384], index: 5, kind: input, shape index: {}]   ;;  %s5617_s6 = inlined_call_operand.hbm [shape: f32[128,384], index: 6, kind: input, shape index: {}]   ;;  %s5618_s7 = inlined_call_operand.hbm [shape: f32[128,384], index: 7, kind: input, shape index: {}]   ;;  %s5619_s8 = inlined_call_operand.vmem [shape: f32[1,384], index: 8, kind: input, shape index: {}]   ;;  %s5620_s9 = inlined_call_operand.vmem [shape: f32[1,384], index: 9, kind: input, shape index: {}]   ;;  %s5621_s10 = inlined_call_operand.hbm [shape: f32[128,128], index: 10, kind: input, shape index: {}]   ;;  %s5622_s11 = inlined_call_operand.vmem [shape: f32[1,128], index: 11, kind: input, shape index: {}]   ;;  %s5623_s12 = inlined_call_operand.hbm [shape: f32[8,128], index: 12, kind: output, shape index: {0}]   ;;  %s5624_s13 = inlined_call_operand.hbm [shape: f32[2,8,128], index: 13, kind: output, shape index: {1}]  }
   0x1   :  { %5635 = sst [smem:[#allocation27_spill]] %s5615_s4 }
   0x2   :  { %5636 = sst [smem:[#allocation28_spill]] %s5616_s5 }
   0x3   :  { %5637 = sst [smem:[#allocation29_spill]] %s5619_s8 }
   0x4   :  { %5638 = sst [smem:[#allocation30_spill]] %s5620_s9 }
   0x5   :  { %5639 = sst [smem:[#allocation31_spill]] %s5622_s11 }
   0x6   :  { %5640 = sst [smem:[#allocation32_spill]] %s5623_s12 }
   0x7   :  { %5641 = sst [smem:[#allocation33_spill]] %s5624_s13 }
   0x8   :  { %19 = vsyncpa [#allocation6], 0 }
   0x9   :  { %21 = vsyncpa [#allocation6 + $0x1], 0 }
   0xa   :  { %22 = vsyncpa [#allocation9], 0 }
   0xb   :  { %23 = vsyncpa [#allocation12], 0 }
   0xc   :  { %24 = vsyncpa [#allocation15], 0 }
   0xd   :  { %25 = vsyncpa [#allocation7], 0 }
   0xe   :  { %26 = vsyncpa [#allocation19], 0  ;;  %s4735_s25 = smov 0   ;;  %s4737_s26 = smov 0  }
   0xf   :  { %s4739_s27 = smov 0   ;;  %s4741_s28 = smov 0  }
  0x10   :  { %s4743_s29 = smov 0   ;;  %s4745_s30 = smov 0  }
  0x11 LB: > { %5642 = sst [smem:[#allocation26_spill]] %s4634_s28  ;;  %s5625_s14 = sadd.s32 4294967295, %s4642_s30   ;;  %s4642_s30 = sphi %s4745_s30, %s32_s30   ;;  %s4638_s29 = sphi %s4743_s29, %s5670_s29   ;;  %s4634_s28 = sphi %s4741_s28, %s5669_s28   ;;  %s4630_s27 = sphi %s4739_s27, %s5668_s27   ;;  %s4626_s26 = sphi %s4737_s26, %s5667_s26   ;;  %s4622_s25 = sphi %s4735_s25, %s5666_s25  }
  0x12   : > { %p2823_p0 = scmp.ge.s32.totalorder %s4642_s30, 1  ;;  %p4769_p1 = scmp.eq.s32.totalorder %s5625_s14, 0 }
  0x13   : > { %p365_p2 = scmp.lt.s32.totalorder %s4642_s30, 3  ;;  %s4644_s17 = smov [#allocation8]  }
  0x14   : > { %s5643_s15 = scalar_select %p4769_p1, 1, 0 }
  0x15   : > { %p4774_p3 = pnand %p2823_p0, %p365_p2  ;;  %s379_s18 = sshll.u32 %s4644_s17, 4  ;;  %s380_s18 = int_to_ptr.vmem [resolvable:$true] %s379_s18 }
  0x16   : > { %s4645_s20 = smov [#allocation11]   ;;  %s4322_s24 = scalar_lea.hbm %s5612_s1, 256 }
  0x17   : > { %s5644_s16 = scalar_select %p4774_p3, 1, 0 }
  0x18   : > { %p4134_p4 = pneg %p4774_p3  ;;  %s405_s21 = sshll.u32 %s4645_s20, 4  ;;  %s406_s21 = int_to_ptr.vmem [resolvable:$true] %s405_s21 }
  0x19   : > { %p4323_p6 = scmp.ne.s32.totalorder %s5612_s1, %s4322_s24  ;;  %p4329_p10 = scmp.lt.u32.totalorder %s4322_s24, %s5612_s1 }
  0x1a   : > { %p4782_p5 = pnand %p4134_p4, %p4769_p1 }
  0x1c   : > { %p4794_p7 = pneg %p4782_p5 }
  0x1e   : > { %p4325_p8 = pnand %p4794_p7, %p4323_p6 }
  0x20   : > { %p4326_p9 = pneg %p4325_p8 }
  0x22   : > { %p4331_p11 = pnand %p4329_p10, %p4326_p9 }
  0x24   : > { %4334 = shalt.err (!%p4331_p11)
}
  0x25   : > { %s4335_s20 = scalar_lea.vmem %s380_s18, 256  ;;  %p4343_p2 = scmp.lt.s32.totalorder %s380_s18, %s380_s18 }
  0x26   : > { %p4336_p12 = scmp.ne.s32.totalorder %s380_s18, %s4335_s20  ;;  %p4344_p4 = scmp.lt.s32.totalorder %s4335_s20, %s4335_s20 }
  0x28   : > { %p4338_p13 = pnand %p4336_p12, %p4794_p7  ;;  %p4345_p3 = por %p4344_p4, %p4343_p2 }
  0x2a   : > { %p4339_p0 = pneg %p4338_p13 }
  0x2c   : > { %p4346_p1 = pnand %p4345_p3, %p4339_p0 }
  0x2e   : > { %4349 = shalt.err (!%p4346_p1)
}
  0x2f   : > { %s5631_s13 = smov 128   ;;  %s5633_s14 = smov 8  }
  0x30   : > { %4137 = dma.hbm_to_vmem [thread:$0]  (!%p4782_p5), %s5612_s1, 256, %s380_s18, [#allocation9], %s5631_s13, %s5631_s13, %s5633_s14  }
  0x31   : > { %s4648_s22 = smov [#allocation14]   ;;  %s4350_s8 = scalar_lea.hbm %s5614_s3, 6144 }
  0x32   : > { %s437_s23 = sshll.u32 %s4648_s22, 4  ;;  %p4351_p1 = scmp.ne.s32.totalorder %s5614_s3, %s4350_s8  ;;  %s438_s23 = int_to_ptr.vmem [resolvable:$true] %s437_s23 }
  0x33   : > { %p4357_p8 = scmp.lt.u32.totalorder %s4350_s8, %s5614_s3 }
  0x34   : > { %p4353_p3 = pnand %p4351_p1, %p4794_p7 }
  0x36   : > { %p4354_p6 = pneg %p4353_p3 }
  0x38   : > { %p4359_p9 = pnand %p4357_p8, %p4354_p6 }
  0x3a   : > { %4362 = shalt.err (!%p4359_p9)
}
  0x3b   : > { %s4363_s18 = scalar_lea.vmem %s406_s21, 6144  ;;  %p4371_p13 = scmp.lt.s32.totalorder %s406_s21, %s406_s21 }
  0x3c   : > { %p4364_p10 = scmp.ne.s32.totalorder %s406_s21, %s4363_s18  ;;  %p4372_p0 = scmp.lt.s32.totalorder %s4363_s18, %s4363_s18 }
  0x3e   : > { %p4366_p11 = pnand %p4364_p10, %p4794_p7  ;;  %p4373_p2 = por %p4372_p0, %p4371_p13 }
  0x40   : > { %p4367_p12 = pneg %p4366_p11 }
  0x42   : > { %p4374_p4 = pnand %p4373_p2, %p4367_p12 }
  0x44   : > { %4377 = shalt.err (!%p4374_p4)
}
  0x45   : > { %s4649_s5 = smov 384   ;;  %s4650_s9 = smov 24  }
  0x46   : > { %4143 = dma.hbm_to_vmem [thread:$0]  (!%p4782_p5), %s5614_s3, 6144, %s406_s21, [#allocation12], %s4649_s5, %s4649_s5, %s4650_s9  }
  0x47   : > { %s4378_s12 = scalar_lea.hbm %s5618_s7, 6144 }
  0x48   : > { %p4379_p1 = scmp.ne.s32.totalorder %s5618_s7, %s4378_s12  ;;  %p4385_p8 = scmp.lt.u32.totalorder %s4378_s12, %s5618_s7 }
  0x4a   : > { %p4381_p3 = pnand %p4379_p1, %p4794_p7 }
  0x4c   : > { %p4382_p6 = pneg %p4381_p3 }
  0x4e   : > { %p4387_p9 = pnand %p4385_p8, %p4382_p6 }
  0x50   : > { %4390 = shalt.err (!%p4387_p9)
}
  0x51   : > { %s4391_s4 = scalar_lea.vmem %s438_s23, 6144  ;;  %p4399_p13 = scmp.lt.s32.totalorder %s438_s23, %s438_s23 }
  0x52   : > { %p4392_p10 = scmp.ne.s32.totalorder %s438_s23, %s4391_s4  ;;  %p4400_p0 = scmp.lt.s32.totalorder %s4391_s4, %s4391_s4 }
  0x54   : > { %p4394_p11 = pnand %p4392_p10, %p4794_p7  ;;  %p4401_p2 = por %p4400_p0, %p4399_p13 }
  0x56   : > { %p4395_p12 = pneg %p4394_p11 }
  0x58   : > { %p4402_p4 = pnand %p4401_p2, %p4395_p12 }
  0x5a   : > { %4405 = shalt.err (!%p4402_p4)
}
  0x5b   : > { %4149 = dma.hbm_to_vmem [thread:$0]  (!%p4782_p5), %s5618_s7, 6144, %s438_s23, [#allocation15], %s4649_s5, %s4649_s5, %s4650_s9  }
  0x5c   : > { %s4651_s28 = smov [#allocation10]   ;;  %s4652_s12 = smov [#allocation13]  }
  0x5d   : > { %s392_s11 = sshll.u32 %s4651_s28, 4  ;;  %s424_s22 = sshll.u32 %s4652_s12, 4  ;;  %s393_s11 = int_to_ptr.vmem [resolvable:$true] %s392_s11  ;;  %s425_s22 = int_to_ptr.vmem [resolvable:$true] %s424_s22 }
  0x5e   : > { %s4406_s18 = scalar_lea.hbm %s5613_s2, 6144 }
  0x5f   : > { %p4407_p1 = scmp.ne.s32.totalorder %s5613_s2, %s4406_s18  ;;  %p4413_p8 = scmp.lt.u32.totalorder %s4406_s18, %s5613_s2 }
  0x61   : > { %p4409_p3 = pnand %p4407_p1, %p4794_p7 }
  0x63   : > { %p4410_p6 = pneg %p4409_p3 }
  0x65   : > { %p4415_p9 = pnand %p4413_p8, %p4410_p6 }
  0x67   : > { %4418 = shalt.err (!%p4415_p9)
}
  0x68   : > { %s4419_s23 = scalar_lea.vmem %s393_s11, 6144  ;;  %p4427_p13 = scmp.lt.s32.totalorder %s393_s11, %s393_s11 }
  0x69   : > { %p4420_p10 = scmp.ne.s32.totalorder %s393_s11, %s4419_s23  ;;  %p4428_p0 = scmp.lt.s32.totalorder %s4419_s23, %s4419_s23 }
  0x6b   : > { %p4422_p11 = pnand %p4420_p10, %p4794_p7  ;;  %p4429_p2 = por %p4428_p0, %p4427_p13 }
  0x6d   : > { %p4423_p12 = pneg %p4422_p11 }
  0x6f   : > { %p4430_p4 = pnand %p4429_p2, %p4423_p12 }
  0x71   : > { %4433 = shalt.err (!%p4430_p4)
}
  0x72   : > { %4140 = dma.hbm_to_vmem [thread:$0]  (!%p4782_p5), %s5613_s2, 6144, %s393_s11, [#allocation9], %s4649_s5, %s4649_s5, %s4650_s9  }
  0x73   : > { %s4434_s12 = scalar_lea.hbm %s5617_s6, 6144 }
  0x74   : > { %p4435_p1 = scmp.ne.s32.totalorder %s5617_s6, %s4434_s12  ;;  %p4441_p8 = scmp.lt.u32.totalorder %s4434_s12, %s5617_s6 }
  0x76   : > { %p4437_p3 = pnand %p4435_p1, %p4794_p7 }
  0x78   : > { %p4438_p6 = pneg %p4437_p3 }
  0x7a   : > { %p4443_p9 = pnand %p4441_p8, %p4438_p6 }
  0x7c   : > { %4446 = shalt.err (!%p4443_p9)
}
  0x7d   : > { %s4447_s21 = scalar_lea.vmem %s425_s22, 6144  ;;  %p4455_p13 = scmp.lt.s32.totalorder %s425_s22, %s425_s22 }
  0x7e   : > { %p4448_p10 = scmp.ne.s32.totalorder %s425_s22, %s4447_s21  ;;  %p4456_p0 = scmp.lt.s32.totalorder %s4447_s21, %s4447_s21 }
  0x80   : > { %p4450_p11 = pnand %p4448_p10, %p4794_p7  ;;  %p4457_p2 = por %p4456_p0, %p4455_p13 }
  0x82   : > { %p4451_p12 = pneg %p4450_p11 }
  0x84   : > { %p4458_p4 = pnand %p4457_p2, %p4451_p12 }
  0x86   : > { %4461 = shalt.err (!%p4458_p4)
}
  0x87   : > { %4146 = dma.hbm_to_vmem [thread:$0]  (!%p4782_p5), %s5617_s6, 6144, %s425_s22, [#allocation12], %s4649_s5, %s4649_s5, %s4650_s9  }
  0x88   : > { %s4653_s13 = smov [#allocation16]   ;;  %s4462_s12 = scalar_lea.hbm %s5621_s10, 2048 }
  0x89   : > { %s456_s14 = sshll.u32 %s4653_s13, 4  ;;  %p4463_p1 = scmp.ne.s32.totalorder %s5621_s10, %s4462_s12  ;;  %s457_s14 = int_to_ptr.vmem [resolvable:$true] %s456_s14 }
  0x8a   : > { %p4469_p8 = scmp.lt.u32.totalorder %s4462_s12, %s5621_s10 }
  0x8b   : > { %p4465_p3 = pnand %p4463_p1, %p4794_p7 }
  0x8d   : > { %p4466_p6 = pneg %p4465_p3 }
  0x8f   : > { %p4471_p9 = pnand %p4469_p8, %p4466_p6 }
  0x91   : > { %4474 = shalt.err (!%p4471_p9)
}
  0x92   : > { %s4475_s5 = scalar_lea.vmem %s457_s14, 2048  ;;  %p4483_p13 = scmp.lt.s32.totalorder %s457_s14, %s457_s14 }
  0x93   : > { %p4476_p10 = scmp.ne.s32.totalorder %s457_s14, %s4475_s5  ;;  %p4484_p0 = scmp.lt.s32.totalorder %s4475_s5, %s4475_s5 }
  0x95   : > { %p4478_p11 = pnand %p4476_p10, %p4794_p7  ;;  %p4485_p2 = por %p4484_p0, %p4483_p13 }
  0x97   : > { %p4479_p12 = pneg %p4478_p11 }
  0x99   : > { %p4486_p4 = pnand %p4485_p2, %p4479_p12 }
  0x9b   : > { %4489 = shalt.err (!%p4486_p4)
}
  0x9c   : > { %s5647_s9 = smov 8   ;;  %s5648_s22 = smov 128  }
  0x9d   : > { %4152 = dma.hbm_to_vmem [thread:$0]  (!%p4782_p5), %s5621_s10, 2048, %s457_s14, [#allocation15], %s5648_s22, %s5648_s22, %s5647_s9  }
  0x9e   : > { %s41_s19 = sadd.s32 1, %s4638_s29  ;;  %s53_s17 = sadd.s32 1, %s4630_s27 }
  0x9f   : > { %p42_p7 = scmp.ge.s32.totalorder %s41_s19, 2  ;;  %p60_p1 = scmp.ne.s32.totalorder %s4630_s27, %s4626_s26 }
  0xa0   : > { %p61_p3 = scmp.eq.s32.totalorder %s4642_s30, 0  ;;  %p66_p6 = scmp.ne.s32.totalorder %s4626_s26, %s4622_s25 }
  0xa1   : > { %s5672_s19 = smov (%p42_p7, %s41_s19), 0  ;;  %p5650_p9 = scmp.ne.s32.totalorder %s5643_s15, 0 }
  0xa2   : > { %p4927_p8 = por %p61_p3, %p60_p1  ;;  %s48_s14 = ssub.s32 %s4638_s29, %s5672_s19 }
  0xa3   : > { %p4933_p10 = por %p5650_p9, %p66_p6  ;;  %p4163_p5 = scmp.lt.s32.totalorder %s4642_s30, 2 }
  0xa4   : > { %p51_p11 = scmp.eq.s32.totalorder %s48_s14, 0  ;;  %s473_s8 = sand.u32 1, %s4630_s27  }
  0xa5   : > { %s2831_s28 = sshll.u32 %s473_s8, 5  ;;  %s2867_s25 = sshll.u32 %s4638_s29, 9 }
  0xa6   : > { %s4942_s12 = scalar_select %p51_p11, %s4630_s27, %s53_s17  }
  0xa7   : > { %s4948_s18 = scalar_lea.hbm %s5611_s0, %s2867_s25  ;;  %s477_s4 = scalar_lea.vmem [#allocation5], %s2831_s28 }
  0xa8   : > { %s485_s5 = sshll.u32 %s477_s4, 4  ;;  %p4954_p12 = pnand %p4163_p5, %p4927_p8  ;;  %s4950_s5 = int_to_ptr.vmem [resolvable:$true] %s485_s5 }
  0xa9   : > { %s4958_s11 = scalar_lea.sflag [#allocation6], %s473_s8  ;;  %s4490_s17 = scalar_lea.hbm %s4948_s18, 512 }
  0xaa   : > { %p4491_p13 = scmp.ne.s32.totalorder %s4948_s18, %s4490_s17  ;;  %p4492_p0 = pneg %p4954_p12 }
  0xab   : > { %s4495_s23 = scalar_lea.hbm %s5611_s0, 1024  ;;  %p4496_p7 = scmp.lt.u32.totalorder %s4948_s18, %s5611_s0 }
  0xac   : > { %p4493_p2 = pnand %p4492_p0, %p4491_p13  ;;  %p4497_p1 = scmp.lt.u32.totalorder %s4495_s23, %s4490_s17 }
  0xad   : > { %p4499_p6 = scmp.lt.u32.totalorder %s4490_s17, %s4948_s18 }
  0xae   : > { %p4494_p4 = pneg %p4493_p2  ;;  %p4498_p3 = por %p4497_p1, %p4496_p7 }
  0xb0   : > { %p4500_p8 = por %p4499_p6, %p4498_p3 }
  0xb2   : > { %p4501_p9 = pnand %p4500_p8, %p4494_p4 }
  0xb4   : > { %4504 = shalt.err (!%p4501_p9)
}
  0xb5   : > { %s4505_s8 = scalar_lea.vmem %s4950_s5, 512  ;;  %s4654_s20 = smov [#allocation5]  }
  0xb6   : > { %p4506_p5 = scmp.ne.s32.totalorder %s4950_s5, %s4505_s8  ;;  %s4510_s4 = sshll.u32 %s4654_s20, 4  ;;  %s4511_s4 = int_to_ptr.vmem [resolvable:$false] %s4510_s4 }
  0xb7   : > { %s4512_s14 = scalar_lea.vmem %s4511_s4, 1024  ;;  %p4513_p2 = scmp.lt.s32.totalorder %s4950_s5, %s4511_s4 }
  0xb8   : > { %p4508_p11 = pnand %p4506_p5, %p4492_p0  ;;  %p4514_p7 = scmp.lt.s32.totalorder %s4512_s14, %s4505_s8 }
  0xba   : > { %p4509_p13 = pneg %p4508_p11  ;;  %p4515_p1 = por %p4514_p7, %p4513_p2 }
  0xbc   : > { %p4516_p3 = pnand %p4515_p1, %p4509_p13 }
  0xbe   : > { %4519 = shalt.err (!%p4516_p3)
}
  0xbf   : > { %4156 = dma.hbm_to_vmem [thread:$0]  (!%p4954_p12), %s4948_s18, 512, %s4950_s5, %s4958_s11, %s5648_s22, %s5648_s22, %s5647_s9  }
  0xc0   : > { %p5653_p0 = scmp.ne.s32.totalorder %s5644_s16, 0 }
  0xc1   : > { %s499_s17 = sand.u32 (!%p5653_p0), 1, %s4626_s26  }
  0xc2   : > { %497 = sbr.rel (%p5653_p0) target bundleno = 2643 (0xa53), region = 68  ;;  %s2835_s28 = sshll.u32 (!%p5653_p0), %s499_s17, 5 }
  0xc3   : > { %s500_s23 = scalar_lea.sflag (!%p5653_p0), [#allocation6], %s499_s17  ;;  %s4992_s25 = scalar_lea.vmem (!%p5653_p0), [#allocation5], %s2835_s28 }
  0xc9   : > { %4597 = dma.done.wait (%p4933_p10), %s500_s23, 512  }
  0xca   : > { %4599 = vsyncadd (%p4933_p10), %s500_s23, 4294966784  ;;  %p5654_p4 = scmp.ne.s32.totalorder %s5643_s15, 0 }
  0xcc   : > { %4601 = dma.done.wait (%p5654_p4), [#allocation9], 6400  }
  0xcd   : > { %4603 = vsyncadd (%p5654_p4), [#allocation9], 4294960896 }
  0xce   : > { %4605 = dma.done.wait (%p5654_p4), [#allocation12], 12288  }
  0xcf   : > { %4607 = vsyncadd (%p5654_p4), [#allocation12], 4294955008 }
  0xd0   : > { %4609 = dma.done.wait (%p5654_p4), [#allocation15], 8192  }
  0xd1   : > { %4611 = vsyncadd (%p5654_p4), [#allocation15], 4294959104  ;;  %s5655_s16 = sld [smem:[#allocation26_spill]] }
  0xd7   : > { %p2842_p10 = scmp.ne.s32.totalorder %s5655_s16, 0 }
  0xd8   : > { %v570_v0 = vld [vmem:[#allocation8] sm:$0xff] (!%p2842_p10)  ;;  %v571_v1 = vld [vmem:[#allocation8 + $0x8] sm:$0xff] (!%p2842_p10) }
  0xd9   : > { %569 = sbr.rel (%p2842_p10) target bundleno = 224 (0xe0), region = 100  ;;  %572 = vst [vmem:[#allocation2] sm:$0xff] (!%p2842_p10), %v570_v0  ;;  %573 = vst [vmem:[#allocation2 + $0x8] sm:$0xff] (!%p2842_p10), %v571_v1 }
  0xe0 PF: > { %v579_v2 = vld [vmem:[#allocation10 + $0x8] sm:$0xff]  ;;  %v582_v3 = vld [vmem:[#allocation10 + $0x20] sm:$0xff]  ;;  %v581_v6 = vld [vmem:[#allocation10 + $0x18] sm:$0xff]  ;;  %v4655_v9 = vmov 0.0   ;;  %vm4657_vm0 = vmmov 0   ;;  %s5656_s22 = sld [smem:[#allocation27_spill]] }
  0xe1   : > { %v578_v4 = vld [vmem:[#allocation10] sm:$0xff]  ;;  %v3452_v5 = vpack.c.bf16 %v582_v3, %v579_v2  ;;  %v585_v7 = vld [vmem:[#allocation10 + $0x38] sm:$0xff]  ;;  %v588_v8 = vld [vmem:[#allocation10 + $0x50] sm:$0xff]  ;;  %707 = vmatprep.mubr.f32.mxu0 %v4655_v9  ;;  %s5657_s5 = sld [smem:[#allocation28_spill]]  ;;  %s5658_s24 = sld [smem:[#allocation30_spill]] }
  0xe2   : > { %v3454_v10 = vpack.c.bf16 %v581_v6, %v578_v4  ;;  %v3456_v11 = vpack.c.bf16 %v588_v8, %v585_v7  ;;  %v584_v12 = vld [vmem:[#allocation10 + $0x30] sm:$0xff]  ;;  %v587_v13 = vld [vmem:[#allocation10 + $0x48] sm:$0xff]  ;;  %v594_v15 = vld [vmem:[#allocation10 + $0x80] sm:$0xff]  ;;  %s5659_s4 = sld [smem:[#allocation29_spill]]  ;;  %s5660_s14 = sld [smem:[#allocation26_spill]] }
  0xe3   : > { %v591_v14 = vld [vmem:[#allocation10 + $0x68] sm:$0xff]  ;;  %3453 = vmatprep.subr.bf16.mxu0 %v3452_v5  ;;  %v3458_v16 = vpack.c.bf16 %v587_v13, %v584_v12  ;;  %v590_v18 = vld [vmem:[#allocation10 + $0x60] sm:$0xff]  ;;  %v593_v19 = vld [vmem:[#allocation10 + $0x78] sm:$0xff] }
  0xe4   : > { %3455 = vmatpush1.bf16.msra.mxu0 %v3454_v10  ;;  %v3460_v17 = vpack.c.bf16 %v594_v15, %v591_v14  ;;  %v597_v20 = vld [vmem:[#allocation10 + $0x98] sm:$0xff]  ;;  %v600_v21 = vld [vmem:[#allocation10 + $0xb0] sm:$0xff]  ;;  %v3462_v22 = vpack.c.bf16 %v593_v19, %v590_v18  ;;  %v599_v25 = vld [vmem:[#allocation10 + $0xa8] sm:$0xff] }
  0xe5   : > { %3457 = vmatprep.subr.bf16.mxu0 %v3456_v11  ;;  %v596_v23 = vld [vmem:[#allocation10 + $0x90] sm:$0xff]  ;;  %v3464_v24 = vpack.c.bf16 %v600_v21, %v597_v20  ;;  %v583_v27 = vld [vmem:[#allocation10 + $0x28] sm:$0xff]  ;;  %v606_v29 = vld [vmem:[#allocation10 + $0xe0] sm:$0xff] }
  0xe6   : > { %v580_v26 = vld [vmem:[#allocation10 + $0x10] sm:$0xff]  ;;  %v603_v28 = vld [vmem:[#allocation10 + $0xc8] sm:$0xff]  ;;  %v586_v31 = vld [vmem:[#allocation10 + $0x40] sm:$0xff]  ;;  %v3466_v33 = vpack.c.bf16 %v599_v25, %v596_v23 }
  0xe7   : > { %v3484_v30 = vpack.c.bf16 %v583_v27, %v580_v26  ;;  %v589_v32 = vld [vmem:[#allocation10 + $0x58] sm:$0xff]  ;;  %v602_v34 = vld [vmem:[#allocation10 + $0xc0] sm:$0xff]  ;;  %v3468_v37 = vpack.c.bf16 %v606_v29, %v603_v28  ;;  %v5013_v38 = vld [vmem:[%s4992_s25] sm:$0xff] }
  0xe8   : > { %3459 = vmatpush1.bf16.msra.mxu0 %v3458_v16  ;;  %v605_v35 = vld [vmem:[#allocation10 + $0xd8] sm:$0xff]  ;;  %v3488_v36 = vpack.c.bf16 %v589_v32, %v586_v31  ;;  %v592_v39 = vld [vmem:[#allocation10 + $0x70] sm:$0xff]  ;;  %v595_v40 = vld [vmem:[#allocation10 + $0x88] sm:$0xff]  ;;  %3093 = vmatprep.mubr.f32.mxu1 %v5013_v38  ;;  %p2859_p12 = scmp.ne.s32.totalorder %s5660_s14, 1 }
  0xe9   : > { %3461 = vmatprep.subr.bf16.mxu0 %v3460_v17  ;;  %3485 = vmatprep.subr.bf16.mxu1 %v3484_v30  ;;  %v609_v41 = vld [vmem:[#allocation10 + $0xf8] sm:$0xff]  ;;  %v612_v42 = vld [vmem:[#allocation10 + $0x110] sm:$0xff]  ;;  %v3492_v43 = vpack.c.bf16 %v595_v40, %v592_v39  ;;  %v598_v44 = vld [vmem:[#allocation10 + $0xa0] sm:$0xff]  ;;  %v3470_v46 = vpack.c.bf16 %v605_v35, %v602_v34  ;;  %vm4659_vm1 = vmmov (!%p2859_p12), 0   ;;  %s5661_s23 = sld [smem:[#allocation31_spill]] (!%p2859_p12) }
  0xea   : > { %3487 = vmatpush3.bf16.msra.mxu1 %v3484_v30  ;;  %v601_v45 = vld [vmem:[#allocation10 + $0xb8] sm:$0xff]  ;;  %v3472_v47 = vpack.c.bf16 %v612_v42, %v609_v41  ;;  %v608_v48 = vld [vmem:[#allocation10 + $0xf0] sm:$0xff]  ;;  %v611_v49 = vld [vmem:[#allocation10 + $0x108] sm:$0xff] }
  0xeb   : > { %3489 = vmatprep.subr.bf16.mxu1 %v3488_v36  ;;  %v615_v50 = vld [vmem:[#allocation10 + $0x128] sm:$0xff]  ;;  %v618_v51 = vld [vmem:[#allocation10 + $0x140] sm:$0xff]  ;;  %v3496_v52 = vpack.c.bf16 %v601_v45, %v598_v44  ;;  %v604_v53 = vld [vmem:[#allocation10 + $0xd0] sm:$0xff]  ;;  %v3474_v55 = vpack.c.bf16 %v611_v49, %v608_v48 }
  0xec   : > { %3463 = vmatpush1.bf16.msra.mxu0 %v3462_v22  ;;  %v607_v54 = vld [vmem:[#allocation10 + $0xe8] sm:$0xff]  ;;  %v3476_v56 = vpack.c.bf16 %v618_v51, %v615_v50  ;;  %v614_v57 = vld [vmem:[#allocation10 + $0x120] sm:$0xff]  ;;  %v617_v58 = vld [vmem:[#allocation10 + $0x138] sm:$0xff] }
  0xed   : > { %3465 = vmatprep.subr.bf16.mxu0 %v3464_v24  ;;  %v621_v59 = vld [vmem:[#allocation10 + $0x158] sm:$0xff]  ;;  %v624_v60 = vld [vmem:[#allocation10 + $0x170] sm:$0xff]  ;;  %v3500_v61 = vpack.c.bf16 %v607_v54, %v604_v53  ;;  %v610_v62 = vld [vmem:[#allocation10 + $0x100] sm:$0xff]  ;;  %v3478_v0 = vpack.c.bf16 %v617_v58, %v614_v57 }
  0xee   : > { %3491 = vmatpush3.bf16.msra.mxu1 %v3488_v36  ;;  %v613_v63 = vld [vmem:[#allocation10 + $0x118] sm:$0xff]  ;;  %v3480_v1 = vpack.c.bf16 %v624_v60, %v621_v59  ;;  %v620_v2 = vld [vmem:[#allocation10 + $0x150] sm:$0xff]  ;;  %v623_v3 = vld [vmem:[#allocation10 + $0x168] sm:$0xff] }
  0xef   : > { %3493 = vmatprep.subr.bf16.mxu1 %v3492_v43  ;;  %v830_v4 = vld [vmem:[#allocation11 + $0x8] sm:$0xff]  ;;  %v833_v5 = vld [vmem:[#allocation11 + $0x20] sm:$0xff]  ;;  %v3504_v6 = vpack.c.bf16 %v613_v63, %v610_v62  ;;  %v616_v7 = vld [vmem:[#allocation10 + $0x130] sm:$0xff]  ;;  %v3482_v10 = vpack.c.bf16 %v623_v3, %v620_v2 }
  0xf0   : > { %3467 = vmatpush1.bf16.msra.mxu0 %v3466_v33  ;;  %v619_v8 = vld [vmem:[#allocation10 + $0x148] sm:$0xff]  ;;  %v5016_v11 = vpack.c.bf16 %v833_v5, %v830_v4  ;;  %v829_v12 = vld [vmem:[#allocation11] sm:$0xff]  ;;  %v832_v13 = vld [vmem:[#allocation11 + $0x18] sm:$0xff] }
  0xf1   : > { %3469 = vmatprep.subr.bf16.mxu0 %v3468_v37  ;;  %v836_v14 = vld [vmem:[#allocation11 + $0x38] sm:$0xff]  ;;  %v839_v15 = vld [vmem:[#allocation11 + $0x50] sm:$0xff]  ;;  %v3508_v16 = vpack.c.bf16 %v619_v8, %v616_v7  ;;  %v622_v17 = vld [vmem:[#allocation10 + $0x160] sm:$0xff]  ;;  %v5018_v19 = vpack.c.bf16 %v832_v13, %v829_v12 }
  0xf2   : > { %3495 = vmatpush3.bf16.msra.mxu1 %v3492_v43  ;;  %v625_v18 = vld [vmem:[#allocation10 + $0x178] sm:$0xff]  ;;  %v5021_v20 = vpack.c.bf16 %v839_v15, %v836_v14  ;;  %v835_v21 = vld [vmem:[#allocation11 + $0x30] sm:$0xff]  ;;  %v838_v22 = vld [vmem:[#allocation11 + $0x48] sm:$0xff]  ;;  %v4656_v43 = vmov 0.0|0.0  }
  0xf3   : > { %3497 = vmatprep.subr.bf16.mxu1 %v3496_v52  ;;  %v842_v23 = vld [vmem:[#allocation11 + $0x68] sm:$0xff]  ;;  %v845_v24 = vld [vmem:[#allocation11 + $0x80] sm:$0xff]  ;;  %v3512_v25 = vpack.c.bf16 %v625_v18, %v622_v17  ;;  %v5025_v26 = vpack.c.bf16 %v838_v22, %v835_v21  ;;  %v575_v27 = vld [vmem:[%s4992_s25 + $0x8] sm:$0xff] }
  0xf4   : > { %3471 = vmatpush1.bf16.msra.mxu0 %v3470_v46  ;;  %v5030_v28 = vpack.c.bf16 %v845_v24, %v842_v23  ;;  %v841_v29 = vld [vmem:[#allocation11 + $0x60] sm:$0xff]  ;;  %v844_v30 = vld [vmem:[#allocation11 + $0x78] sm:$0xff]  ;;  %v851_v32 = vld [vmem:[#allocation11 + $0xb0] sm:$0xff] }
  0xf5   : > { %3473 = vmatprep.subr.bf16.mxu0 %v3472_v47  ;;  %v848_v31 = vld [vmem:[#allocation11 + $0x98] sm:$0xff]  ;;  %v831_v33 = vld [vmem:[#allocation11 + $0x10] sm:$0xff]  ;;  %v834_v34 = vld [vmem:[#allocation11 + $0x28] sm:$0xff]  ;;  %v5033_v35 = vpack.c.bf16 %v844_v30, %v841_v29 }
  0xf6   : > { %3499 = vmatpush3.bf16.msra.mxu1 %v3496_v52  ;;  %v576_v36 = vld [vmem:[%s4992_s25 + $0x10] sm:$0xff]  ;;  %v5038_v37 = vpack.c.bf16 %v851_v32, %v848_v31  ;;  %v850_v39 = vld [vmem:[#allocation11 + $0xa8] sm:$0xff]  ;;  %v5040_v41 = vpack.c.bf16 %v834_v34, %v831_v33  ;;  %v840_v45 = vld [vmem:[#allocation11 + $0x58] sm:$0xff]  ;;  %v628_v32 = vlaneseq }
  0xf7   : > { %3501 = vmatprep.subr.bf16.mxu1 %v3500_v61  ;;  %v854_v40 = vld [vmem:[#allocation11 + $0xc8] sm:$0xff]  ;;  %v857_v42 = vld [vmem:[#allocation11 + $0xe0] sm:$0xff]  ;;  %v856_v50 = vld [vmem:[#allocation11 + $0xd8] sm:$0xff] }
  0xf8   : > { %3475 = vmatpush1.bf16.msra.mxu0 %v3474_v55  ;;  %v837_v44 = vld [vmem:[#allocation11 + $0x40] sm:$0xff]  ;;  %v577_v47 = vld [vmem:[%s4992_s25 + $0x18] sm:$0xff]  ;;  %v5048_v48 = vpack.c.bf16 %v857_v42, %v854_v40  ;;  %v860_v51 = vld [vmem:[#allocation11 + $0xf8] sm:$0xff]  ;;  %v629_v33 = vshrl.u32 %v628_v32, 7 }
  0xf9   : > { %3477 = vmatprep.subr.bf16.mxu0 %v3476_v56  ;;  %v853_v49 = vld [vmem:[#allocation11 + $0xc0] sm:$0xff]  ;;  %v5051_v52 = vpack.c.bf16 %v840_v45, %v837_v44  ;;  %v863_v53 = vld [vmem:[#allocation11 + $0x110] sm:$0xff]  ;;  %v846_v55 = vld [vmem:[#allocation11 + $0x88] sm:$0xff] }
  0xfa   : > { %3503 = vmatpush3.bf16.msra.mxu1 %v3500_v61  ;;  %v843_v54 = vld [vmem:[#allocation11 + $0x70] sm:$0xff]  ;;  %v5056_v56 = vpack.c.bf16 %v856_v50, %v853_v49  ;;  %v5060_v57 = vpack.c.bf16 %v863_v53, %v860_v51  ;;  %v862_v59 = vld [vmem:[#allocation11 + $0x108] sm:$0xff]  ;;  %v869_v62 = vld [vmem:[#allocation11 + $0x140] sm:$0xff]  ;;  %v5147_v34 = vsub.s32 2, %v629_v33  ;;  %v5159_v50 = vsub.s32 0, %v629_v33 }
  0xfb   : > { %3505 = vmatprep.subr.bf16.mxu1 %v3504_v6  ;;  %v859_v58 = vld [vmem:[#allocation11 + $0xf0] sm:$0xff]  ;;  %v866_v60 = vld [vmem:[#allocation11 + $0x128] sm:$0xff]  ;;  %v5063_v61 = vpack.c.bf16 %v846_v55, %v843_v54  ;;  %v849_v63 = vld [vmem:[#allocation11 + $0xa0] sm:$0xff]  ;;  %v5164_v53 = vsub.s32 1, %v629_v33 }
  0xfc   : > { %3479 = vmatpush1.bf16.msra.mxu0 %v3478_v0  ;;  %v852_v0 = vld [vmem:[#allocation11 + $0xb8] sm:$0xff]  ;;  %v5072_v2 = vpack.c.bf16 %v869_v62, %v866_v60  ;;  %v865_v3 = vld [vmem:[#allocation11 + $0x120] sm:$0xff]  ;;  %v875_v7 = vld [vmem:[#allocation11 + $0x170] sm:$0xff] }
  0xfd   : > { %3481 = vmatprep.subr.bf16.mxu0 %v3480_v1  ;;  %v5069_v1 = vpack.c.bf16 %v862_v59, %v859_v58  ;;  %v868_v4 = vld [vmem:[#allocation11 + $0x138] sm:$0xff]  ;;  %v855_v8 = vld [vmem:[#allocation11 + $0xd0] sm:$0xff]  ;;  %v874_v15 = vld [vmem:[#allocation11 + $0x168] sm:$0xff] }
  0xfe   : > { %3507 = vmatpush3.bf16.msra.mxu1 %v3504_v6  ;;  %v872_v5 = vld [vmem:[#allocation11 + $0x158] sm:$0xff]  ;;  %v5075_v6 = vpack.c.bf16 %v852_v0, %v849_v63  ;;  %v5079_v12 = vpack.c.bf16 %v868_v4, %v865_v3  ;;  %v871_v14 = vld [vmem:[#allocation11 + $0x150] sm:$0xff]  ;;  %v861_v17 = vld [vmem:[#allocation11 + $0x100] sm:$0xff] }
  0xff   : > { %3509 = vmatprep.subr.bf16.mxu1 %v3508_v16  ;;  %v5082_v13 = vpack.c.bf16 %v875_v7, %v872_v5  ;;  %v864_v18 = vld [vmem:[#allocation11 + $0x118] sm:$0xff]  ;;  %v5089_v21 = vpack.c.bf16 %v874_v15, %v871_v14  ;;  %v867_v23 = vld [vmem:[#allocation11 + $0x130] sm:$0xff]  ;;  %v870_v24 = vld [vmem:[#allocation11 + $0x148] sm:$0xff] }
 0x100   : > { %3483 = vmatpush1.bf16.msra.mxu0 %v3482_v10  ;;  %v858_v10 = vld [vmem:[#allocation11 + $0xe8] sm:$0xff]  ;;  %v5093_v22 = vpack.c.bf16 %v864_v18, %v861_v17  ;;  %v873_v29 = vld [vmem:[#allocation11 + $0x160] sm:$0xff]  ;;  %v876_v30 = vld [vmem:[#allocation11 + $0x178] sm:$0xff] }
 0x101   : > { %3517 = vmatprep.subr.bf16.mxu0 %v5016_v11  ;;  %v5108_v31 = vpack.c.bf16 %v876_v30, %v873_v29  ;;  %v877_v51 = vld [vmem:[%s5657_s5] sm:$0x7] }
 0x102   : > { %3511 = vmatpush3.bf16.msra.mxu1 %v3508_v16  ;;  %v5085_v16 = vpack.c.bf16 %v858_v10, %v855_v8  ;;  %v882_v55 = vrot.slane %v877_v51, %v5159_v50  ;;  %v886_v59 = vrot.slane %v877_v51, %v5164_v53  ;;  %v5177_v17 = vrot.slane %v877_v51, %v5147_v34 }
 0x103   : > { %708 = vmatmul.mubr.f32.vlgmr.msra.gmra.mrb[0].mxu0 %v5013_v38  ;;  %3513 = vmatprep.subr.bf16.mxu1 %v3512_v25  ;;  %v847_v38 = vld [vmem:[#allocation11 + $0x90] sm:$0xff] }
 0x104   : > { %3519 = vmatpush1.bf16.msra.mxu0 %v5018_v19  ;;  %713 = vmatprep.mubr.f32.mxu0 %v4655_v9  ;;  %v5044_v46 = vpack.c.bf16 %v850_v39, %v847_v38 }
 0x105   : > { %3521 = vmatprep.subr.bf16.mxu0 %v5021_v20 }
 0x106   : > { %3515 = vmatpush3.bf16.msra.mxu1 %v3512_v25  ;;  %v5097_v25 = vld [vmem:[#allocation2] sm:$0xff] }
 0x107   : > { %714 = vmatmul.mubr.f32.gmra.mrb[2].mxu0 %v575_v27  ;;  %3548 = vmatprep.subr.bf16.mxu1 %v4656_v43 }
 0x108   : > { %3523 = vmatpush1.bf16.msra.mxu0 %v5025_v26  ;;  %719 = vmatprep.mubr.f32.mxu0 %v4655_v9 }
 0x109   : > { %3525 = vmatprep.subr.bf16.mxu0 %v5030_v28  ;;  %3094 = vmatmul.mubr.f32.vlgmr.msra.gmra.mrb[0].mxu1 %v575_v27  ;;  %v5100_v27 = vpack.c.bf16 %v870_v24, %v867_v23 }
 0x10a   : > { %3550 = vmatpush3.bf16.msra.mxu1 %v5040_v41  ;;  %3096 = vmatprep.mubr.f32.mxu1 %v576_v36 }
 0x10b   : > { %720 = vmatmul.mubr.f32.gmra.mrb[4].mxu0 %v576_v36  ;;  %3551 = vmatprep.subr.bf16.mxu1 %v4656_v43  ;;  %v626_v36 = vld [vmem:[%s5656_s22] sm:$0x7] }
 0x10c   : > { %3527 = vmatpush1.bf16.msra.mxu0 %v5033_v35  ;;  %725 = vmatprep.mubr.f32.mxu0 %v4655_v9  ;;  %v639_v38 = vrot.slane %v626_v36, %v5147_v34  ;;  %v631_v54 = vrot.slane %v626_v36, %v5159_v50  ;;  %v635_v58 = vrot.slane %v626_v36, %v5164_v53 }
 0x10d   : > { %3529 = vmatprep.subr.bf16.mxu0 %v5038_v37  ;;  %3097 = vmatmul.mubr.f32.gmra.mrb[2].mxu1 %v577_v47 }
 0x10e   : > { %3553 = vmatpush3.bf16.msra.mxu1 %v5051_v52  ;;  %3131 = vmatprep.mubr.msk.f32.mxu1 %vm4657_vm0, %v4655_v9  ;;  %v5170_v60 = vadd.f32 %v882_v55, %v631_v54  ;;  %v5172_v63 = vadd.f32 %v886_v59, %v635_v58 }
 0x10f   : > { %726 = vmatmul.mubr.f32.gmra.mrb[6].mxu0 %v577_v47  ;;  %3554 = vmatprep.subr.bf16.mxu1 %v4656_v43 }
 0x110   : > { %3531 = vmatpush1.bf16.msra.mxu0 %v5044_v46  ;;  %965 = vmatprep.mubr.f32.mxu0 %v4655_v9 }
 0x111   : > { %3533 = vmatprep.subr.bf16.mxu0 %v5048_v48 }
 0x112   : > { %3556 = vmatpush3.bf16.msra.mxu1 %v5063_v61 }
 0x113   : > { %3557 = vmatprep.subr.bf16.mxu1 %v4656_v43 }
 0x114   : > { %3535 = vmatpush1.bf16.msra.mxu0 %v5056_v56 }
 0x115   : > { %3537 = vmatprep.subr.bf16.mxu0 %v5060_v57 }
 0x116   : > { %3559 = vmatpush3.bf16.msra.mxu1 %v5075_v6 }
 0x117   : > { %3560 = vmatprep.subr.bf16.mxu1 %v4656_v43 }
 0x118   : > { %3539 = vmatpush1.bf16.msra.mxu0 %v5069_v1 }
 0x119   : > { %3541 = vmatprep.subr.bf16.mxu0 %v5072_v2 }
 0x11a   : > { %3562 = vmatpush3.bf16.msra.mxu1 %v5085_v16 }
 0x11b   : > { %3563 = vmatprep.subr.bf16.mxu1 %v4656_v43 }
 0x11c   : > { %3543 = vmatpush1.bf16.msra.mxu0 %v5079_v12 }
 0x11d   : > { %3545 = vmatprep.subr.bf16.mxu0 %v5082_v13 }
 0x11e   : > { %3565 = vmatpush3.bf16.msra.mxu1 %v5093_v22 }
 0x11f   : > { %3566 = vmatprep.subr.bf16.mxu1 %v4656_v43 }
 0x120   : > { %3547 = vmatpush1.bf16.msra.mxu0 %v5089_v21 }
 0x121   : > { %3573 = vmatprep.subr.bf16.mxu0 %v5016_v11 }
 0x122   : > { %3568 = vmatpush3.bf16.msra.mxu1 %v5100_v27 }
 0x123   : > { %966 = vmatmul.mubr.f32.vlgmr.msra.gmra.mrb[0].mxu0 %v5097_v25  ;;  %3569 = vmatprep.subr.bf16.mxu1 %v4656_v43 }
 0x124   : > { %3575 = vmatpush1.bf16.msra.mxu0 %v5018_v19  ;;  %1134 = vmatprep.mubr.f32.mxu0 %v4655_v9 }
 0x125   : > { %3577 = vmatprep.subr.bf16.mxu0 %v5021_v20 }
 0x126   : > { %3571 = vmatpush3.bf16.msra.mxu1 %v5108_v31 }
 0x127   : > { %3604 = vmatprep.subr.bf16.mxu1 %v4656_v43 }
 0x128   : > { %3579 = vmatpush1.bf16.msra.mxu0 %v5025_v26 }
 0x129   : > { %3581 = vmatprep.subr.bf16.mxu0 %v5030_v28  ;;  %3132 = vmatmul.mubr.f32.vlgmr.msra.gmra.mrb[4].mxu1 %v5097_v25 }
 0x12a   : > { %3606 = vmatpush3.bf16.msra.mxu1 %v5040_v41  ;;  %3166 = vmatprep.mubr.msk.f32.mxu1 %vm4657_vm0, %v4655_v9 }
 0x12b   : > { %3607 = vmatprep.subr.bf16.mxu1 %v4656_v43 }
 0x12c   : > { %3583 = vmatpush1.bf16.msra.mxu0 %v5033_v35 }
 0x12d   : > { %3585 = vmatprep.subr.bf16.mxu0 %v5038_v37 }
 0x12e   : > { %3609 = vmatpush3.bf16.msra.mxu1 %v5051_v52 }
 0x12f   : > { %3610 = vmatprep.subr.bf16.mxu1 %v4656_v43 }
 0x130   : > { %3587 = vmatpush1.bf16.msra.mxu0 %v5044_v46 }
 0x131   : > { %3589 = vmatprep.subr.bf16.mxu0 %v5048_v48 }
 0x132   : > { %3612 = vmatpush3.bf16.msra.mxu1 %v5063_v61 }
 0x133   : > { %3613 = vmatprep.subr.bf16.mxu1 %v4656_v43 }
 0x134   : > { %3591 = vmatpush1.bf16.msra.mxu0 %v5056_v56 }
 0x135   : > { %3593 = vmatprep.subr.bf16.mxu0 %v5060_v57 }
 0x136   : > { %3615 = vmatpush3.bf16.msra.mxu1 %v5075_v6 }
 0x137   : > { %3616 = vmatprep.subr.bf16.mxu1 %v4656_v43 }
 0x138   : > { %3595 = vmatpush1.bf16.msra.mxu0 %v5069_v1 }
 0x139   : > { %3597 = vmatprep.subr.bf16.mxu0 %v5072_v2 }
 0x13a   : > { %3618 = vmatpush3.bf16.msra.mxu1 %v5085_v16 }
 0x13b   : > { %3619 = vmatprep.subr.bf16.mxu1 %v4656_v43 }
 0x13c   : > { %3599 = vmatpush1.bf16.msra.mxu0 %v5079_v12 }
 0x13d   : > { %3601 = vmatprep.subr.bf16.mxu0 %v5082_v13 }
 0x13e   : > { %3621 = vmatpush3.bf16.msra.mxu1 %v5093_v22 }
 0x13f   : > { %3622 = vmatprep.subr.bf16.mxu1 %v4656_v43 }
 0x140   : > { %3603 = vmatpush1.bf16.msra.mxu0 %v5089_v21 }
 0x141   : > { %3629 = vmatprep.subr.bf16.mxu0 %v5016_v11 }
 0x142   : > { %3624 = vmatpush3.bf16.msra.mxu1 %v5100_v27 }
 0x143   : > { %3625 = vmatprep.subr.bf16.mxu1 %v4656_v43 }
 0x146   : > { %3627 = vmatpush3.bf16.msra.mxu1 %v5108_v31 }
 0x147   : > { %3660 = vmatprep.subr.bf16.mxu1 %v4656_v43 }
 0x1dc   : > { %v3095_v39 = vpop.f32.mrb[0].mxu1 }
 0x1dd   : > { %v5153_v40 = vadd.f32 %v3095_v39, %v639_v38  ;;  %v798_v42 = vpop.f32.mrb[1].mxu1 }
 0x1de   : > { %v799_v30 = vadd.f32 %v798_v42, %v639_v38 }
 0x1e0   : > { %v3098_v44 = vpop.f32.mrb[2].mxu1 }
 0x1e1   : > { %v5155_v45 = vadd.f32 %v3098_v44, %v639_v38  ;;  %v808_v47 = vpop.f32.mrb[3].mxu1 }
 0x1e2   : > { %v5157_v49 = vadd.f32 %v808_v47, %v639_v38 }
 0x1f6   : > { %v967_v62 = vpop.f32.mrb[0].mxu0 }
 0x1f7   : > { %v4053_v0 = vadd.f32 %v5170_v60, %v967_v62  ;;  %v969_v3 = vpop.f32.mrb[1].mxu0 }
 0x1f8   : > { %v4055_v5 = vadd.f32 %v5172_v63, %v969_v3 }
 0x1f9   : > { %v2843_v4 = vmul.f32 -1.442695, %v4053_v0 }
 0x1fa   : > { %v2844_v7 = vmul.f32 -1.442695, %v4055_v5 }
 0x1fb   : > { %4242 = vpow2.f32 %v2843_v4 }
 0x1fc   : > { %v1038_v8 = vpop.f32.mrb[4].mxu1  ;;  %4244 = vpow2.f32 %v2844_v7 }
 0x1fd   : > { %v3133_v10 = vpop.f32.mrb[5].mxu1  ;;  %v1039_v24 = vadd.f32 %v1038_v8, %v5177_v17 }
 0x205   : > { %v4243_v14 = vpop.eup %4242 }
 0x206   : > { %v1046_v15 = vadd.f32 1.0, %v4243_v14  ;;  %v4245_v18 = vpop.eup %4244 }
 0x207   : > { %v1053_v23 = vadd.f32 1.0, %v4245_v18 }
 0x208   : > { %4246 = vrcp.f32 %v1046_v15 }
 0x209   : > { %4248 = vrcp.f32 %v1053_v23 }
 0x212   : > { %v4247_v29 = vpop.eup %4246 }
 0x213   : > { %v1056_v32 = vmul.f32 %v4247_v29, %v1039_v24  ;;  %v4249_v36 = vpop.eup %4248 }
 0x214   : > { %v1059_v39 = vsub.f32 1.0, %v4249_v36  ;;  %v1061_v54 = vmul.f32 %v4249_v36, %v5097_v25 }
 0x215   : > { %v1057_v33 = vadd.f32 %v1056_v32, %v799_v30  ;;  %v1579_v32 = vld [vmem:[#allocation13] sm:$0xff] }
 0x217   : > { %4250 = vtanh.f32 %v1057_v33  ;;  %v1582_v33 = vld [vmem:[#allocation13 + $0x18] sm:$0xff] }
 0x221   : > { %v4251_v44 = vpop.eup %4250 }
 0x222   : > { %v1060_v47 = vmul.f32 %v4251_v44, %v1059_v39  ;;  %v1586_v39 = vld [vmem:[#allocation13 + $0x38] sm:$0xff]  ;;  %v1589_v44 = vld [vmem:[#allocation13 + $0x50] sm:$0xff] }
 0x224   : > { %v5181_v55 = vadd.f32 %v1061_v54, %v1060_v47 }
 0x226   : > { %1135 = vmatmul.mubr.f32.vlgmr.msra.gmra.mrb[2].mxu0 %v5181_v55  ;;  %3167 = vmatmul.mubr.f32.vlgmr.msra.gmra.mrb[6].mxu1 %v5181_v55 }
 0x227   : > { %3631 = vmatpush1.bf16.msra.mxu0 %v5018_v19  ;;  %3662 = vmatpush3.bf16.msra.mxu1 %v5040_v41 }
 0x228   : > { %3633 = vmatprep.subr.bf16.mxu0 %v5021_v20  ;;  %3663 = vmatprep.subr.bf16.mxu1 %v4656_v43 }
 0x229   : > { %1304 = vmatprep.mubr.f32.mxu0 %v4655_v9  ;;  %3201 = vmatprep.mubr.msk.f32.mxu1 %vm4657_vm0, %v4655_v9 }
 0x22b   : > { %3635 = vmatpush1.bf16.msra.mxu0 %v5025_v26  ;;  %3665 = vmatpush3.bf16.msra.mxu1 %v5051_v52 }
 0x22c   : > { %3637 = vmatprep.subr.bf16.mxu0 %v5030_v28  ;;  %3666 = vmatprep.subr.bf16.mxu1 %v4656_v43 }
 0x22f   : > { %3639 = vmatpush1.bf16.msra.mxu0 %v5033_v35  ;;  %3668 = vmatpush3.bf16.msra.mxu1 %v5063_v61 }
 0x230   : > { %3641 = vmatprep.subr.bf16.mxu0 %v5038_v37  ;;  %3669 = vmatprep.subr.bf16.mxu1 %v4656_v43 }
 0x233   : > { %3643 = vmatpush1.bf16.msra.mxu0 %v5044_v46  ;;  %3671 = vmatpush3.bf16.msra.mxu1 %v5075_v6 }
 0x234   : > { %3645 = vmatprep.subr.bf16.mxu0 %v5048_v48  ;;  %3672 = vmatprep.subr.bf16.mxu1 %v4656_v43 }
 0x237   : > { %3647 = vmatpush1.bf16.msra.mxu0 %v5056_v56  ;;  %3674 = vmatpush3.bf16.msra.mxu1 %v5085_v16 }
 0x238   : > { %3649 = vmatprep.subr.bf16.mxu0 %v5060_v57  ;;  %3675 = vmatprep.subr.bf16.mxu1 %v4656_v43 }
 0x23b   : > { %3651 = vmatpush1.bf16.msra.mxu0 %v5069_v1  ;;  %3677 = vmatpush3.bf16.msra.mxu1 %v5093_v22 }
 0x23c   : > { %3653 = vmatprep.subr.bf16.mxu0 %v5072_v2  ;;  %3678 = vmatprep.subr.bf16.mxu1 %v4656_v43 }
 0x23f   : > { %3655 = vmatpush1.bf16.msra.mxu0 %v5079_v12  ;;  %3680 = vmatpush3.bf16.msra.mxu1 %v5100_v27 }
 0x240   : > { %3657 = vmatprep.subr.bf16.mxu0 %v5082_v13  ;;  %3681 = vmatprep.subr.bf16.mxu1 %v4656_v43 }
 0x243   : > { %3659 = vmatpush1.bf16.msra.mxu0 %v5089_v21  ;;  %3683 = vmatpush3.bf16.msra.mxu1 %v5108_v31 }
 0x244   : > { %3685 = vmatprep.subr.bf16.mxu0 %v5016_v11  ;;  %3716 = vmatprep.subr.bf16.mxu1 %v4656_v43 }
 0x2f9   : > { %v1136_v25 = vpop.f32.mrb[2].mxu0  ;;  %v1207_v38 = vpop.f32.mrb[6].mxu1 }
 0x2fa   : > { %v4057_v42 = vadd.f32 %v5170_v60, %v1136_v25  ;;  %v1138_v51 = vpop.f32.mrb[3].mxu0  ;;  %v3168_v58 = vpop.f32.mrb[7].mxu1  ;;  %v1208_v11 = vadd.f32 %v1207_v38, %v5177_v17  ;;  %v1587_v25 = vld [vmem:[#allocation13 + $0x40] sm:$0xff]  ;;  %v1590_v38 = vld [vmem:[#allocation13 + $0x58] sm:$0xff] }
 0x2fb   : > { %v4059_v62 = vadd.f32 %v5172_v63, %v1138_v51  ;;  %v3744_v58 = vpack.c.bf16 %v1589_v44, %v1586_v39 }
 0x2fc   : > { %v2845_v59 = vmul.f32 -1.442695, %v4057_v42  ;;  %v3742_v42 = vpack.c.bf16 %v1582_v33, %v1579_v32  ;;  %v1617_v32 = vld [vmem:[#allocation13 + $0x130] sm:$0xff]  ;;  %v1620_v33 = vld [vmem:[#allocation13 + $0x148] sm:$0xff] }
 0x2fd   : > { %v2846_v0 = vmul.f32 -1.442695, %v4059_v62  ;;  %v1588_v62 = vld [vmem:[#allocation13 + $0x48] sm:$0xff]  ;;  %v3796_v44 = vpack.c.bf16 %v1620_v33, %v1617_v32  ;;  %v1832_v33 = vld [vmem:[#allocation14 + $0x10] sm:$0xff] }
 0x2fe   : > { %4252 = vpow2.f32 %v2845_v59  ;;  %v1585_v59 = vld [vmem:[#allocation13 + $0x30] sm:$0xff] }
 0x2ff   : > { %4254 = vpow2.f32 %v2846_v0  ;;  %v3776_v0 = vpack.c.bf16 %v1590_v38, %v1587_v25  ;;  %v1622_v25 = vld [vmem:[#allocation13 + $0x158] sm:$0xff]  ;;  %v1625_v38 = vld [vmem:[#allocation13 + $0x170] sm:$0xff] }
 0x308   : > { %v4253_v3 = vpop.eup %4252 }
 0x309   : > { %v1215_v4 = vadd.f32 1.0, %v4253_v3  ;;  %v4255_v5 = vpop.eup %4254  ;;  %v1595_v3 = vld [vmem:[#allocation13 + $0x80] sm:$0xff] }
 0x30a   : > { %v1222_v7 = vadd.f32 1.0, %v4255_v5  ;;  %v1596_v5 = vld [vmem:[#allocation13 + $0x88] sm:$0xff] }
 0x30b   : > { %4256 = vrcp.f32 %v1215_v4  ;;  %v1593_v4 = vld [vmem:[#allocation13 + $0x70] sm:$0xff] }
 0x30c   : > { %4258 = vrcp.f32 %v1222_v7  ;;  %v3746_v7 = vpack.c.bf16 %v1588_v62, %v1585_v59  ;;  %v3768_v62 = vpack.c.bf16 %v1625_v38, %v1622_v25  ;;  %v1873_v38 = vld [vmem:[#allocation14 + $0x158] sm:$0xff] }
 0x315   : > { %v4257_v8 = vpop.eup %4256 }
 0x316   : > { %v1225_v10 = vmul.f32 %v4257_v8, %v1208_v11  ;;  %v4259_v15 = vpop.eup %4258  ;;  %v3780_v8 = vpack.c.bf16 %v1596_v5, %v1593_v4  ;;  %v1831_v5 = vld [vmem:[#allocation14 + $0x8] sm:$0xff] }
 0x317   : > { %v1228_v18 = vsub.f32 1.0, %v4259_v15  ;;  %v1230_v29 = vmul.f32 %v4259_v15, %v5181_v55  ;;  %v1598_v15 = vld [vmem:[#allocation13 + $0x98] sm:$0xff] }
 0x318   : > { %v1226_v14 = vadd.f32 %v1225_v10, %v5153_v40  ;;  %v1591_v10 = vld [vmem:[#allocation13 + $0x60] sm:$0xff] }
 0x31a   : > { %4260 = vtanh.f32 %v1226_v14  ;;  %v1594_v14 = vld [vmem:[#allocation13 + $0x78] sm:$0xff] }
 0x324   : > { %v4261_v23 = vpop.eup %4260 }
 0x325   : > { %v1229_v24 = vmul.f32 %v4261_v23, %v1228_v18  ;;  %v1601_v18 = vld [vmem:[#allocation13 + $0xb0] sm:$0xff]  ;;  %v1599_v23 = vld [vmem:[#allocation13 + $0xa0] sm:$0xff] }
 0x327   : > { %v5225_v30 = vadd.f32 %v1230_v29, %v1229_v24  ;;  %v1602_v24 = vld [vmem:[#allocation13 + $0xb8] sm:$0xff]  ;;  %v3750_v29 = vpack.c.bf16 %v1594_v14, %v1591_v10 }
 0x328   : > { %v1837_v14 = vld [vmem:[#allocation14 + $0x38] sm:$0xff] }
 0x329   : > { %1305 = vmatmul.mubr.f32.vlgmr.msra.gmra.mrb[4].mxu0 %v5225_v30  ;;  %3202 = vmatmul.mubr.f32.vlgmr.msra.gmra.mrb[8].mxu1 %v5225_v30 }
 0x32a   : > { %3687 = vmatpush1.bf16.msra.mxu0 %v5018_v19  ;;  %3718 = vmatpush3.bf16.msra.mxu1 %v5040_v41  ;;  %v1580_v19 = vld [vmem:[#allocation13 + $0x8] sm:$0xff] }
 0x32b   : > { %3689 = vmatprep.subr.bf16.mxu0 %v5021_v20  ;;  %3719 = vmatprep.subr.bf16.mxu1 %v4656_v43  ;;  %v1583_v20 = vld [vmem:[#allocation13 + $0x20] sm:$0xff] }
 0x32c   : > { %1474 = vmatprep.mubr.f32.mxu0 %v4655_v9  ;;  %3236 = vmatprep.mubr.msk.f32.mxu1 %vm4657_vm0, %v4655_v9 }
 0x32e   : > { %3691 = vmatpush1.bf16.msra.mxu0 %v5025_v26  ;;  %3721 = vmatpush3.bf16.msra.mxu1 %v5051_v52  ;;  %v1581_v26 = vld [vmem:[#allocation13 + $0x10] sm:$0xff] }
 0x32f   : > { %3693 = vmatprep.subr.bf16.mxu0 %v5030_v28  ;;  %3722 = vmatprep.subr.bf16.mxu1 %v4656_v43  ;;  %v3740_v28 = vpack.c.bf16 %v1583_v20, %v1580_v19  ;;  %v3752_v19 = vpack.c.bf16 %v1601_v18, %v1598_v15  ;;  %v3784_v20 = vpack.c.bf16 %v1602_v24, %v1599_v23  ;;  %v1836_v18 = vld [vmem:[#allocation14 + $0x30] sm:$0xff]  ;;  %v1839_v23 = vld [vmem:[#allocation14 + $0x48] sm:$0xff] }
 0x330   : > { %v5290_v24 = vpack.c.bf16 %v1839_v23, %v1836_v18  ;;  %v1856_v18 = vld [vmem:[#allocation14 + $0xd0] sm:$0xff]  ;;  %v1859_v23 = vld [vmem:[#allocation14 + $0xe8] sm:$0xff] }
 0x332   : > { %3695 = vmatpush1.bf16.msra.mxu0 %v5033_v35  ;;  %3724 = vmatpush3.bf16.msra.mxu1 %v5063_v61  ;;  %v1584_v35 = vld [vmem:[#allocation13 + $0x28] sm:$0xff] }
 0x333   : > { %3697 = vmatprep.subr.bf16.mxu0 %v5038_v37  ;;  %3725 = vmatprep.subr.bf16.mxu1 %v4656_v43  ;;  %v3772_v37 = vpack.c.bf16 %v1584_v35, %v1581_v26  ;;  %v1597_v26 = vld [vmem:[#allocation13 + $0x90] sm:$0xff]  ;;  %v1604_v35 = vld [vmem:[#allocation13 + $0xc8] sm:$0xff] }
 0x336   : > { %3699 = vmatpush1.bf16.msra.mxu0 %v5044_v46  ;;  %3727 = vmatpush3.bf16.msra.mxu1 %v5075_v6 }
 0x337   : > { %3701 = vmatprep.subr.bf16.mxu0 %v5048_v48  ;;  %3728 = vmatprep.subr.bf16.mxu1 %v4656_v43 }
 0x33a   : > { %3703 = vmatpush1.bf16.msra.mxu0 %v5056_v56  ;;  %3730 = vmatpush3.bf16.msra.mxu1 %v5085_v16 }
 0x33b   : > { %3705 = vmatprep.subr.bf16.mxu0 %v5060_v57  ;;  %3731 = vmatprep.subr.bf16.mxu1 %v4656_v43 }
 0x33e   : > { %3707 = vmatpush1.bf16.msra.mxu0 %v5069_v1  ;;  %3733 = vmatpush3.bf16.msra.mxu1 %v5093_v22 }
 0x33f   : > { %3709 = vmatprep.subr.bf16.mxu0 %v5072_v2  ;;  %3734 = vmatprep.subr.bf16.mxu1 %v4656_v43 }
 0x342   : > { %3711 = vmatpush1.bf16.msra.mxu0 %v5079_v12  ;;  %3736 = vmatpush3.bf16.msra.mxu1 %v5100_v27 }
 0x343   : > { %3713 = vmatprep.subr.bf16.mxu0 %v5082_v13  ;;  %3737 = vmatprep.subr.bf16.mxu1 %v4656_v43 }
 0x346   : > { %3715 = vmatpush1.bf16.msra.mxu0 %v5089_v21  ;;  %3739 = vmatpush3.bf16.msra.mxu1 %v5108_v31 }
 0x347   : > { %3741 = vmatprep.subr.bf16.mxu0 %v3740_v28  ;;  %3773 = vmatprep.subr.bf16.mxu1 %v3772_v37  ;;  %v1600_v28 = vld [vmem:[#allocation13 + $0xa8] sm:$0xff] }
 0x3fc   : > { %v1306_v41 = vpop.f32.mrb[4].mxu0  ;;  %v1377_v46 = vpop.f32.mrb[8].mxu1 }
 0x3fd   : > { %v4061_v48 = vadd.f32 %v5170_v60, %v1306_v41  ;;  %v1308_v52 = vpop.f32.mrb[5].mxu0  ;;  %v3203_v56 = vpop.f32.mrb[9].mxu1  ;;  %v1378_v16 = vadd.f32 %v1377_v46, %v5177_v17  ;;  %v1605_v41 = vld [vmem:[#allocation13 + $0xd0] sm:$0xff]  ;;  %v1608_v46 = vld [vmem:[#allocation13 + $0xe8] sm:$0xff] }
 0x3fe   : > { %v4063_v61 = vadd.f32 %v5172_v63, %v1308_v52  ;;  %v3788_v56 = vpack.c.bf16 %v1608_v46, %v1605_v41  ;;  %v1852_v41 = vld [vmem:[#allocation14 + $0xb0] sm:$0xff] }
 0x3ff   : > { %v2847_v57 = vmul.f32 -1.442695, %v4061_v48  ;;  %v3754_v48 = vpack.c.bf16 %v1600_v28, %v1597_v26  ;;  %v1842_v26 = vld [vmem:[#allocation14 + $0x60] sm:$0xff]  ;;  %v1845_v28 = vld [vmem:[#allocation14 + $0x78] sm:$0xff] }
 0x400   : > { %v2848_v1 = vmul.f32 -1.442695, %v4063_v61  ;;  %v1606_v61 = vld [vmem:[#allocation13 + $0xd8] sm:$0xff] }
 0x401   : > { %4262 = vpow2.f32 %v2847_v57  ;;  %v1603_v57 = vld [vmem:[#allocation13 + $0xc0] sm:$0xff] }
 0x402   : > { %4264 = vpow2.f32 %v2848_v1  ;;  %v1610_v1 = vld [vmem:[#allocation13 + $0xf8] sm:$0xff] }
 0x40b   : > { %v4263_v2 = vpop.eup %4262 }
 0x40c   : > { %v1385_v6 = vadd.f32 1.0, %v4263_v2  ;;  %v4265_v12 = vpop.eup %4264  ;;  %v1613_v2 = vld [vmem:[#allocation13 + $0x110] sm:$0xff] }
 0x40d   : > { %v1392_v13 = vadd.f32 1.0, %v4265_v12  ;;  %v1614_v12 = vld [vmem:[#allocation13 + $0x118] sm:$0xff] }
 0x40e   : > { %4266 = vrcp.f32 %v1385_v6  ;;  %v1611_v6 = vld [vmem:[#allocation13 + $0x100] sm:$0xff] }
 0x40f   : > { %4268 = vrcp.f32 %v1392_v13  ;;  %v3758_v13 = vpack.c.bf16 %v1606_v61, %v1603_v57  ;;  %v1855_v57 = vld [vmem:[#allocation14 + $0xc8] sm:$0xff]  ;;  %v1858_v61 = vld [vmem:[#allocation14 + $0xe0] sm:$0xff] }
 0x418   : > { %v4267_v21 = vpop.eup %4266 }
 0x419   : > { %v1395_v22 = vmul.f32 %v4267_v21, %v1378_v16  ;;  %v4269_v31 = vpop.eup %4268  ;;  %v3760_v16 = vpack.c.bf16 %v1613_v2, %v1610_v1  ;;  %v3792_v21 = vpack.c.bf16 %v1614_v12, %v1611_v6  ;;  %v1854_v1 = vld [vmem:[#allocation14 + $0xc0] sm:$0xff]  ;;  %v5306_v2 = vpack.c.bf16 %v1858_v61, %v1855_v57  ;;  %v1857_v6 = vld [vmem:[#allocation14 + $0xd8] sm:$0xff] }
 0x41a   : > { %v1398_v40 = vsub.f32 1.0, %v4269_v31  ;;  %v1400_v54 = vmul.f32 %v4269_v31, %v5225_v30  ;;  %v1616_v31 = vld [vmem:[#allocation13 + $0x128] sm:$0xff]  ;;  %v1861_v12 = vld [vmem:[#allocation14 + $0xf8] sm:$0xff] }
 0x41b   : > { %v1396_v27 = vadd.f32 %v1395_v22, %v5157_v49  ;;  %v1592_v49 = vld [vmem:[#allocation13 + $0x68] sm:$0xff]  ;;  %v1609_v22 = vld [vmem:[#allocation13 + $0xf0] sm:$0xff]  ;;  %v1877_v57 = vld [vmem:[#allocation14 + $0x178] sm:$0xff] }
 0x41c   : > { %v3748_v11 = vpack.c.bf16 %v1595_v3, %v1592_v49  ;;  %v1624_v3 = vld [vmem:[#allocation13 + $0x168] sm:$0xff] }
 0x41d   : > { %4270 = vtanh.f32 %v1396_v27  ;;  %v1612_v27 = vld [vmem:[#allocation13 + $0x108] sm:$0xff] }
 0x427   : > { %v4271_v36 = vpop.eup %4270 }
 0x428   : > { %v1399_v47 = vmul.f32 %v4271_v36, %v1398_v40  ;;  %v1619_v40 = vld [vmem:[#allocation13 + $0x140] sm:$0xff]  ;;  %v3762_v36 = vpack.c.bf16 %v1612_v27, %v1609_v22  ;;  %v1860_v22 = vld [vmem:[#allocation14 + $0xf0] sm:$0xff]  ;;  %v1863_v27 = vld [vmem:[#allocation14 + $0x108] sm:$0xff] }
 0x429   : > { %v3764_v39 = vpack.c.bf16 %v1619_v40, %v1616_v31  ;;  %v1867_v31 = vld [vmem:[#allocation14 + $0x128] sm:$0xff]  ;;  %v1870_v40 = vld [vmem:[#allocation14 + $0x140] sm:$0xff]  ;;  %v5314_v32 = vpack.c.bf16 %v1863_v27, %v1860_v22 }
 0x42a   : > { %v5267_v51 = vadd.f32 %v1400_v54, %v1399_v47  ;;  %v1615_v47 = vld [vmem:[#allocation13 + $0x120] sm:$0xff]  ;;  %v1618_v54 = vld [vmem:[#allocation13 + $0x138] sm:$0xff] }
 0x42b   : > { %v3766_v59 = vpack.c.bf16 %v1618_v54, %v1615_v47  ;;  %v1869_v47 = vld [vmem:[#allocation14 + $0x138] sm:$0xff] }
 0x42c   : > { %1475 = vmatmul.mubr.f32.vlgmr.msra.gmra.mrb[6].mxu0 %v5267_v51  ;;  %3237 = vmatmul.mubr.f32.vlgmr.msra.gmra.mrb[10].mxu1 %v5267_v51 }
 0x42d   : > { %3743 = vmatpush1.bf16.msra.mxu0 %v3742_v42  ;;  %3775 = vmatpush3.bf16.msra.mxu1 %v3772_v37  ;;  %v1607_v37 = vld [vmem:[#allocation13 + $0xe0] sm:$0xff] }
 0x42e   : > { %3271 = vmatprep.mubr.f32.mxu1 %v5181_v55  ;;  %3745 = vmatprep.subr.bf16.mxu0 %v3744_v58  ;;  %v3756_v52 = vpack.c.bf16 %v1607_v37, %v1604_v35  ;;  %v1623_v42 = vld [vmem:[#allocation13 + $0x160] sm:$0xff]  ;;  %v1626_v58 = vld [vmem:[#allocation13 + $0x178] sm:$0xff]  ;;  %v5296_v35 = vpack.c.bf16 %v1845_v28, %v1842_v26 }
 0x42f   : > { %3777 = vmatprep.subr.bf16.mxu1 %v3776_v0  ;;  %1708 = vmatprep.mubr.f32.mxu0 %v4655_v9  ;;  %v3800_v49 = vpack.c.bf16 %v1626_v58, %v1623_v42  ;;  %v1849_v37 = vld [vmem:[#allocation14 + $0x98] sm:$0xff]  ;;  %v1876_v42 = vld [vmem:[#allocation14 + $0x170] sm:$0xff] }
 0x430   : > { %v5300_v46 = vpack.c.bf16 %v1852_v41, %v1849_v37  ;;  %v5328_v58 = vpack.c.bf16 %v1876_v42, %v1873_v38  ;;  %v1865_v26 = vld [vmem:[#allocation14 + $0x118] sm:$0xff]  ;;  %v1868_v37 = vld [vmem:[#allocation14 + $0x130] sm:$0xff]  ;;  %v1871_v41 = vld [vmem:[#allocation14 + $0x148] sm:$0xff] }
 0x431   : > { %3747 = vmatpush1.bf16.msra.mxu0 %v3746_v7  ;;  %3779 = vmatpush3.bf16.msra.mxu1 %v3776_v0  ;;  %v1621_v0 = vld [vmem:[#allocation13 + $0x150] sm:$0xff]  ;;  %v1834_v7 = vld [vmem:[#allocation14 + $0x20] sm:$0xff] }
 0x432   : > { %3749 = vmatprep.subr.bf16.mxu0 %v3748_v11  ;;  %3781 = vmatprep.subr.bf16.mxu1 %v3780_v8  ;;  %v3770_v4 = vpack.c.bf16 %v1624_v3, %v1621_v0  ;;  %v5282_v11 = vpack.c.bf16 %v1834_v7, %v1831_v5  ;;  %v1838_v0 = vld [vmem:[#allocation14 + $0x40] sm:$0xff]  ;;  %v1841_v3 = vld [vmem:[#allocation14 + $0x58] sm:$0xff]  ;;  %v1844_v5 = vld [vmem:[#allocation14 + $0x70] sm:$0xff] }
 0x433   : > { %v1847_v7 = vld [vmem:[#allocation14 + $0x88] sm:$0xff] }
 0x435   : > { %3751 = vmatpush1.bf16.msra.mxu0 %v3750_v29  ;;  %3783 = vmatpush3.bf16.msra.mxu1 %v3780_v8  ;;  %v1830_v8 = vld [vmem:[#allocation14] sm:$0xff]  ;;  %v1843_v29 = vld [vmem:[#allocation14 + $0x68] sm:$0xff] }
 0x436   : > { %3753 = vmatprep.subr.bf16.mxu0 %v3752_v19  ;;  %3785 = vmatprep.subr.bf16.mxu1 %v3784_v20  ;;  %v1846_v19 = vld [vmem:[#allocation14 + $0x80] sm:$0xff] }
 0x439   : > { %3755 = vmatpush1.bf16.msra.mxu0 %v3754_v48  ;;  %3787 = vmatpush3.bf16.msra.mxu1 %v3784_v20  ;;  %v5294_v20 = vpack.c.bf16 %v1846_v19, %v1843_v29  ;;  %v1848_v48 = vld [vmem:[#allocation14 + $0x90] sm:$0xff]  ;;  %v5346_v29 = vpack.c.bf16 %v1859_v23, %v1856_v18  ;;  %v1862_v19 = vld [vmem:[#allocation14 + $0x100] sm:$0xff] }
 0x43a   : > { %3757 = vmatprep.subr.bf16.mxu0 %v3756_v52  ;;  %3789 = vmatprep.subr.bf16.mxu1 %v3788_v56  ;;  %v1851_v52 = vld [vmem:[#allocation14 + $0xa8] sm:$0xff]  ;;  %v5350_v28 = vpack.c.bf16 %v1865_v26, %v1862_v19 }
 0x43d   : > { %3759 = vmatpush1.bf16.msra.mxu0 %v3758_v13  ;;  %3791 = vmatpush3.bf16.msra.mxu1 %v3788_v56  ;;  %v5302_v56 = vpack.c.bf16 %v1851_v52, %v1848_v48  ;;  %v1864_v13 = vld [vmem:[#allocation14 + $0x110] sm:$0xff]  ;;  %v5354_v48 = vpack.c.bf16 %v1871_v41, %v1868_v37  ;;  %v1874_v52 = vld [vmem:[#allocation14 + $0x160] sm:$0xff] }
 0x43e   : > { %3761 = vmatprep.subr.bf16.mxu0 %v3760_v16  ;;  %3793 = vmatprep.subr.bf16.mxu1 %v3792_v21  ;;  %v5308_v16 = vpack.c.bf16 %v1857_v6, %v1854_v1  ;;  %v5358_v61 = vpack.c.bf16 %v1877_v57, %v1874_v52 }
 0x441   : > { %3763 = vmatpush1.bf16.msra.mxu0 %v3762_v36  ;;  %3795 = vmatpush3.bf16.msra.mxu1 %v3792_v21  ;;  %v5310_v21 = vpack.c.bf16 %v1864_v13, %v1861_v12  ;;  %v1835_v36 = vld [vmem:[#allocation14 + $0x28] sm:$0xff] }
 0x442   : > { %3765 = vmatprep.subr.bf16.mxu0 %v3764_v39  ;;  %3797 = vmatprep.subr.bf16.mxu1 %v3796_v44  ;;  %v5317_v39 = vpack.c.bf16 %v1870_v40, %v1867_v31  ;;  %v5319_v54 = vpack.c.bf16 %v1835_v36, %v1832_v33 }
 0x445   : > { %3767 = vmatpush1.bf16.msra.mxu0 %v3766_v59  ;;  %3799 = vmatpush3.bf16.msra.mxu1 %v3796_v44  ;;  %v1866_v44 = vld [vmem:[#allocation14 + $0x120] sm:$0xff]  ;;  %v1872_v59 = vld [vmem:[#allocation14 + $0x150] sm:$0xff] }
 0x446   : > { %3769 = vmatprep.subr.bf16.mxu0 %v3768_v62  ;;  %3801 = vmatprep.subr.bf16.mxu1 %v3800_v49  ;;  %v5323_v25 = vpack.c.bf16 %v1869_v47, %v1866_v44  ;;  %v1875_v62 = vld [vmem:[#allocation14 + $0x168] sm:$0xff] }
 0x449   : > { %3771 = vmatpush1.bf16.msra.mxu0 %v3770_v4  ;;  %3803 = vmatpush3.bf16.msra.mxu1 %v3800_v49  ;;  %v5330_v49 = vpack.c.bf16 %v1875_v62, %v1872_v59  ;;  %v5333_v4 = vpack.c.bf16 %v1841_v3, %v1838_v0 }
 0x44a   : > { %3836 = vmatprep.subr.bf16.mxu1 %v4656_v43  ;;  %3805 = vmatprep.subr.bf16.mxu0 %v5282_v11 }
 0x44c   : > { %1709 = vmatmul.mubr.f32.vlgmr.msra.gmra.mrb[8].mxu0 %v5181_v55  ;;  %3272 = vmatmul.mubr.f32.vlgmr.msra.gmra.mrb[12].mxu1 %v5225_v30  ;;  %v1833_v55 = vld [vmem:[#allocation14 + $0x18] sm:$0xff] }
 0x44d   : > { %3274 = vmatprep.mubr.f32.mxu1 %v5267_v51  ;;  %1714 = vmatprep.mubr.f32.mxu0 %v4655_v9  ;;  %v5284_v10 = vpack.c.bf16 %v1833_v55, %v1830_v8  ;;  %v1850_v8 = vld [vmem:[#allocation14 + $0xa0] sm:$0xff]  ;;  %v5339_v55 = vpack.c.bf16 %v1847_v7, %v1844_v5 }
 0x44e   : > { %3838 = vmatpush3.bf16.msra.mxu1 %v5319_v54 }
 0x44f   : > { %3807 = vmatpush1.bf16.msra.mxu0 %v5284_v10  ;;  %3839 = vmatprep.subr.bf16.mxu1 %v4656_v43 }
 0x450   : > { %1715 = vmatmul.mubr.f32.gmra.mrb[10].mxu0 %v5225_v30  ;;  %v1840_v30 = vld [vmem:[#allocation14 + $0x50] sm:$0xff] }
 0x451   : > { %1720 = vmatprep.mubr.f32.mxu0 %v4655_v9  ;;  %v5288_v15 = vpack.c.bf16 %v1840_v30, %v1837_v14  ;;  %v1853_v14 = vld [vmem:[#allocation14 + $0xb8] sm:$0xff] }
 0x452   : > { %3841 = vmatpush3.bf16.msra.mxu1 %v5333_v4  ;;  %v5342_v30 = vpack.c.bf16 %v1853_v14, %v1850_v8 }
 0x453   : > { %3809 = vmatprep.subr.bf16.mxu0 %v5288_v15  ;;  %3842 = vmatprep.subr.bf16.mxu1 %v4656_v43 }
 0x454   : > { %1721 = vmatmul.mubr.f32.gmra.mrb[12].mxu0 %v5267_v51 }
 0x455   : > { %1726 = vmatprep.mubr.f32.mxu0 %v4655_v9  ;;  %3811 = vmatpush1.bf16.msra.mxu0 %v5290_v24 }
 0x456   : > { %3813 = vmatprep.subr.bf16.mxu0 %v5294_v20  ;;  %3844 = vmatpush3.bf16.msra.mxu1 %v5339_v55 }
 0x457   : > { %3845 = vmatprep.subr.bf16.mxu1 %v4656_v43 }
 0x459   : > { %3815 = vmatpush1.bf16.msra.mxu0 %v5296_v35 }
 0x45a   : > { %3817 = vmatprep.subr.bf16.mxu0 %v5300_v46  ;;  %3847 = vmatpush3.bf16.msra.mxu1 %v5342_v30 }
 0x45b   : > { %3848 = vmatprep.subr.bf16.mxu1 %v4656_v43 }
 0x45d   : > { %3819 = vmatpush1.bf16.msra.mxu0 %v5302_v56 }
 0x45e   : > { %3821 = vmatprep.subr.bf16.mxu0 %v5306_v2  ;;  %3850 = vmatpush3.bf16.msra.mxu1 %v5346_v29 }
 0x45f   : > { %3851 = vmatprep.subr.bf16.mxu1 %v4656_v43 }
 0x461   : > { %3823 = vmatpush1.bf16.msra.mxu0 %v5308_v16 }
 0x462   : > { %3825 = vmatprep.subr.bf16.mxu0 %v5310_v21  ;;  %3853 = vmatpush3.bf16.msra.mxu1 %v5350_v28 }
 0x463   : > { %3854 = vmatprep.subr.bf16.mxu1 %v4656_v43 }
 0x465   : > { %3827 = vmatpush1.bf16.msra.mxu0 %v5314_v32 }
 0x466   : > { %3829 = vmatprep.subr.bf16.mxu0 %v5317_v39  ;;  %3856 = vmatpush3.bf16.msra.mxu1 %v5354_v48 }
 0x467   : > { %3857 = vmatprep.subr.bf16.mxu1 %v4656_v43 }
 0x469   : > { %3831 = vmatpush1.bf16.msra.mxu0 %v5323_v25 }
 0x46a   : > { %3833 = vmatprep.subr.bf16.mxu0 %v5328_v58  ;;  %3859 = vmatpush3.bf16.msra.mxu1 %v5358_v61 }
 0x46b   : > { %3892 = vmatprep.subr.bf16.mxu1 %v4656_v43 }
 0x46d   : > { %3835 = vmatpush1.bf16.msra.mxu0 %v5330_v49 }
 0x46e   : > { %3861 = vmatprep.subr.bf16.mxu0 %v5282_v11 }
 0x4ff   : > { %v1476_v1 = vpop.f32.mrb[6].mxu0  ;;  %v1547_v6 = vpop.f32.mrb[10].mxu1 }
 0x500   : > { %v4065_v12 = vadd.f32 %v5170_v60, %v1476_v1  ;;  %v1478_v13 = vpop.f32.mrb[7].mxu0  ;;  %v3238_v22 = vpop.f32.mrb[11].mxu1  ;;  %v1548_v38 = vadd.f32 %v1547_v6, %v5177_v17  ;;  %v5373_v17 = vld [vmem:[#allocation2 + $0x8] sm:$0xff] }
 0x501   : > { %v4067_v31 = vadd.f32 %v5172_v63, %v1478_v13 }
 0x502   : > { %v2849_v27 = vmul.f32 -1.442695, %v4065_v12 }
 0x503   : > { %v2850_v40 = vmul.f32 -1.442695, %v4067_v31 }
 0x504   : > { %4272 = vpow2.f32 %v2849_v27 }
 0x505   : > { %4274 = vpow2.f32 %v2850_v40 }
 0x50e   : > { %v4273_v33 = vpop.eup %4272 }
 0x50f   : > { %v1555_v36 = vadd.f32 1.0, %v4273_v33  ;;  %v4275_v44 = vpop.eup %4274 }
 0x510   : > { %v1562_v47 = vadd.f32 1.0, %v4275_v44 }
 0x511   : > { %4276 = vrcp.f32 %v1555_v36 }
 0x512   : > { %4278 = vrcp.f32 %v1562_v47 }
 0x51b   : > { %v4277_v42 = vpop.eup %4276 }
 0x51c   : > { %v1565_v59 = vmul.f32 %v4277_v42, %v1548_v38  ;;  %v4279_v63 = vpop.eup %4278 }
 0x51d   : > { %v1568_v3 = vsub.f32 1.0, %v4279_v63  ;;  %v1570_v8 = vmul.f32 %v4279_v63, %v5267_v51  ;;  %v1627_v51 = vld [vmem:[%s5659_s4] sm:$0x7] }
 0x51e   : > { %v1566_v60 = vadd.f32 %v1565_v59, %v5155_v45  ;;  %v1878_v45 = vld [vmem:[%s5658_s24] sm:$0x7]  ;;  %v1632_v18 = vrot.slane %v1627_v51, %v5159_v50  ;;  %v1636_v26 = vrot.slane %v1627_v51, %v5164_v53  ;;  %v5438_v44 = vrot.slane %v1627_v51, %v5147_v34 }
 0x51f   : > { %v5367_v62 = vpop.f32.mrb[12].mxu1  ;;  %v1883_v23 = vrot.slane %v1878_v45, %v5159_v50  ;;  %v1887_v37 = vrot.slane %v1878_v45, %v5164_v53  ;;  %v5435_v33 = vrot.slane %v1878_v45, %v5147_v34 }
 0x520   : > { %4280 = vtanh.f32 %v1566_v60  ;;  %v5369_v0 = vpop.f32.mrb[13].mxu1 }
 0x521   : > { %v5428_v52 = vadd.f32 %v1883_v23, %v1632_v18  ;;  %v5430_v1 = vadd.f32 %v1887_v37, %v1636_v26  ;;  %v1800_v59 = vadd.f32 %v5369_v0, %v5438_v44 }
 0x52a   : > { %v4281_v5 = vpop.eup %4280 }
 0x52b   : > { %v1569_v7 = vmul.f32 %v4281_v5, %v1568_v3 }
 0x52d   : > { %v1571_v14 = vadd.f32 %v1570_v8, %v1569_v7 }
 0x52f   : > { %1574 = vst [vmem:[#allocation2] sm:$0xff] %v1571_v14  ;;  %1727 = vmatmul.mubr.f32.gmra.mrb[14].mxu0 %v1571_v14  ;;  %3275 = vmatmul.mubr.f32.gmra.mrb[14].mxu1 %v1571_v14 }
 0x530   : > { %1964 = vmatprep.mubr.f32.mxu0 %v4655_v9  ;;  %3309 = vmatprep.mubr.msk.f32.mxu1 %vm4657_vm0, %v4655_v9 }
 0x533   : > { %1965 = vmatmul.mubr.f32.vlgmr.msra.gmra.mrb[8].mxu0 %v5373_v17  ;;  %3310 = vmatmul.mubr.f32.vlgmr.msra.gmra.mrb[16].mxu1 %v5373_v17 }
 0x534   : > { %3863 = vmatpush1.bf16.msra.mxu0 %v5284_v10  ;;  %3894 = vmatpush3.bf16.msra.mxu1 %v5319_v54 }
 0x535   : > { %3865 = vmatprep.subr.bf16.mxu0 %v5288_v15  ;;  %3895 = vmatprep.subr.bf16.mxu1 %v4656_v43 }
 0x536   : > { %2129 = vmatprep.mubr.f32.mxu0 %v4655_v9  ;;  %3344 = vmatprep.mubr.msk.f32.mxu1 %vm4657_vm0, %v4655_v9 }
 0x538   : > { %3867 = vmatpush1.bf16.msra.mxu0 %v5290_v24  ;;  %3897 = vmatpush3.bf16.msra.mxu1 %v5333_v4 }
 0x539   : > { %3869 = vmatprep.subr.bf16.mxu0 %v5294_v20  ;;  %3898 = vmatprep.subr.bf16.mxu1 %v4656_v43 }
 0x53c   : > { %3871 = vmatpush1.bf16.msra.mxu0 %v5296_v35  ;;  %3900 = vmatpush3.bf16.msra.mxu1 %v5339_v55 }
 0x53d   : > { %3873 = vmatprep.subr.bf16.mxu0 %v5300_v46  ;;  %3901 = vmatprep.subr.bf16.mxu1 %v4656_v43 }
 0x540   : > { %3875 = vmatpush1.bf16.msra.mxu0 %v5302_v56  ;;  %3903 = vmatpush3.bf16.msra.mxu1 %v5342_v30 }
 0x541   : > { %3877 = vmatprep.subr.bf16.mxu0 %v5306_v2  ;;  %3904 = vmatprep.subr.bf16.mxu1 %v4656_v43 }
 0x544   : > { %3879 = vmatpush1.bf16.msra.mxu0 %v5308_v16  ;;  %3906 = vmatpush3.bf16.msra.mxu1 %v5346_v29 }
 0x545   : > { %3881 = vmatprep.subr.bf16.mxu0 %v5310_v21  ;;  %3907 = vmatprep.subr.bf16.mxu1 %v4656_v43 }
 0x548   : > { %3883 = vmatpush1.bf16.msra.mxu0 %v5314_v32  ;;  %3909 = vmatpush3.bf16.msra.mxu1 %v5350_v28 }
 0x549   : > { %3885 = vmatprep.subr.bf16.mxu0 %v5317_v39  ;;  %3910 = vmatprep.subr.bf16.mxu1 %v4656_v43 }
 0x54c   : > { %3887 = vmatpush1.bf16.msra.mxu0 %v5323_v25  ;;  %3912 = vmatpush3.bf16.msra.mxu1 %v5354_v48 }
 0x54d   : > { %3889 = vmatprep.subr.bf16.mxu0 %v5328_v58  ;;  %3913 = vmatprep.subr.bf16.mxu1 %v4656_v43 }
 0x550   : > { %3891 = vmatpush1.bf16.msra.mxu0 %v5330_v49  ;;  %3915 = vmatpush3.bf16.msra.mxu1 %v5358_v61 }
 0x551   : > { %3917 = vmatprep.subr.bf16.mxu0 %v5282_v11  ;;  %3948 = vmatprep.subr.bf16.mxu1 %v4656_v43 }
 0x602   : > { %v5422_v19 = vpop.f32.mrb[14].mxu1 }
 0x603   : > { %v5426_v41 = vpop.f32.mrb[15].mxu1 }
 0x606   : > { %v1966_v57 = vpop.f32.mrb[8].mxu0  ;;  %v2037_v6 = vpop.f32.mrb[16].mxu1 }
 0x607   : > { %v4069_v12 = vadd.f32 %v5428_v52, %v1966_v57  ;;  %v1968_v13 = vpop.f32.mrb[9].mxu0  ;;  %v3311_v22 = vpop.f32.mrb[17].mxu1  ;;  %v2038_v38 = vadd.f32 %v2037_v6, %v5435_v33 }
 0x608   : > { %v4071_v50 = vadd.f32 %v5430_v1, %v1968_v13 }
 0x609   : > { %v2851_v27 = vmul.f32 -1.442695, %v4069_v12 }
 0x60a   : > { %v2852_v31 = vmul.f32 -1.442695, %v4071_v50 }
 0x60b   : > { %4282 = vpow2.f32 %v2851_v27  ;;  %v1805_v27 = vadd.f32 %v5367_v62, %v5438_v44 }
 0x60c   : > { %4284 = vpow2.f32 %v2852_v31 }
 0x615   : > { %v4283_v40 = vpop.eup %4282 }
 0x616   : > { %v2045_v53 = vadd.f32 1.0, %v4283_v40  ;;  %v4285_v36 = vpop.eup %4284 }
 0x617   : > { %v2052_v47 = vadd.f32 1.0, %v4285_v36 }
 0x618   : > { %4286 = vrcp.f32 %v2045_v53 }
 0x619   : > { %4288 = vrcp.f32 %v2052_v47 }
 0x622   : > { %v4287_v42 = vpop.eup %4286 }
 0x623   : > { %v2055_v60 = vmul.f32 %v4287_v42, %v2038_v38  ;;  %v4289_v3 = vpop.eup %4288 }
 0x624   : > { %v2058_v5 = vsub.f32 1.0, %v4289_v3  ;;  %v2060_v14 = vmul.f32 %v4289_v3, %v5373_v17 }
 0x625   : > { %v2056_v63 = vadd.f32 %v2055_v60, %v1800_v59 }
 0x627   : > { %4290 = vtanh.f32 %v2056_v63 }
 0x631   : > { %v4291_v7 = vpop.eup %4290 }
 0x632   : > { %v2059_v8 = vmul.f32 %v4291_v7, %v2058_v5 }
 0x634   : > { %v5444_v45 = vadd.f32 %v2060_v14, %v2059_v8 }
 0x636   : > { %2130 = vmatmul.mubr.f32.vlgmr.msra.gmra.mrb[10].mxu0 %v5444_v45  ;;  %3345 = vmatmul.mubr.f32.vlgmr.msra.gmra.mrb[18].mxu1 %v5444_v45 }
 0x637   : > { %3919 = vmatpush1.bf16.msra.mxu0 %v5284_v10  ;;  %3950 = vmatpush3.bf16.msra.mxu1 %v5319_v54 }
 0x638   : > { %3921 = vmatprep.subr.bf16.mxu0 %v5288_v15  ;;  %3951 = vmatprep.subr.bf16.mxu1 %v4656_v43 }
 0x639   : > { %2294 = vmatprep.mubr.f32.mxu0 %v4655_v9  ;;  %3379 = vmatprep.mubr.msk.f32.mxu1 %vm4657_vm0, %v4655_v9 }
 0x63b   : > { %3923 = vmatpush1.bf16.msra.mxu0 %v5290_v24  ;;  %3953 = vmatpush3.bf16.msra.mxu1 %v5333_v4 }
 0x63c   : > { %3925 = vmatprep.subr.bf16.mxu0 %v5294_v20  ;;  %3954 = vmatprep.subr.bf16.mxu1 %v4656_v43 }
 0x63f   : > { %3927 = vmatpush1.bf16.msra.mxu0 %v5296_v35  ;;  %3956 = vmatpush3.bf16.msra.mxu1 %v5339_v55 }
 0x640   : > { %3929 = vmatprep.subr.bf16.mxu0 %v5300_v46  ;;  %3957 = vmatprep.subr.bf16.mxu1 %v4656_v43 }
 0x643   : > { %3931 = vmatpush1.bf16.msra.mxu0 %v5302_v56  ;;  %3959 = vmatpush3.bf16.msra.mxu1 %v5342_v30 }
 0x644   : > { %3933 = vmatprep.subr.bf16.mxu0 %v5306_v2  ;;  %3960 = vmatprep.subr.bf16.mxu1 %v4656_v43 }
 0x647   : > { %3935 = vmatpush1.bf16.msra.mxu0 %v5308_v16  ;;  %3962 = vmatpush3.bf16.msra.mxu1 %v5346_v29 }
 0x648   : > { %3937 = vmatprep.subr.bf16.mxu0 %v5310_v21  ;;  %3963 = vmatprep.subr.bf16.mxu1 %v4656_v43 }
 0x64b   : > { %3939 = vmatpush1.bf16.msra.mxu0 %v5314_v32  ;;  %3965 = vmatpush3.bf16.msra.mxu1 %v5350_v28 }
 0x64c   : > { %3941 = vmatprep.subr.bf16.mxu0 %v5317_v39  ;;  %3966 = vmatprep.subr.bf16.mxu1 %v4656_v43 }
 0x64f   : > { %3943 = vmatpush1.bf16.msra.mxu0 %v5323_v25  ;;  %3968 = vmatpush3.bf16.msra.mxu1 %v5354_v48 }
 0x650   : > { %3945 = vmatprep.subr.bf16.mxu0 %v5328_v58  ;;  %3969 = vmatprep.subr.bf16.mxu1 %v4656_v43 }
 0x653   : > { %3947 = vmatpush1.bf16.msra.mxu0 %v5330_v49  ;;  %3971 = vmatpush3.bf16.msra.mxu1 %v5358_v61 }
 0x654   : > { %3973 = vmatprep.subr.bf16.mxu0 %v5282_v11  ;;  %4004 = vmatprep.subr.bf16.mxu1 %v4656_v43 }
 0x709   : > { %v2131_v34 = vpop.f32.mrb[10].mxu0  ;;  %v2202_v0 = vpop.f32.mrb[18].mxu1 }
 0x70a   : > { %v4073_v17 = vadd.f32 %v5428_v52, %v2131_v34  ;;  %v2133_v51 = vpop.f32.mrb[11].mxu0  ;;  %v3346_v18 = vpop.f32.mrb[19].mxu1  ;;  %v2203_v11 = vadd.f32 %v2202_v0, %v5435_v33  ;;  %v1815_v0 = vadd.f32 %v5422_v19, %v5438_v44  ;;  %v4658_v19 = vmov (!%p2859_p12), 0.0|0.0  }
 0x70b   : > { %v4075_v26 = vadd.f32 %v5430_v1, %v2133_v51 }
 0x70c   : > { %v2853_v23 = vmul.f32 -1.442695, %v4073_v17 }
 0x70d   : > { %v2854_v37 = vmul.f32 -1.442695, %v4075_v26 }
 0x70e   : > { %4292 = vpow2.f32 %v2853_v23 }
 0x70f   : > { %4294 = vpow2.f32 %v2854_v37 }
 0x718   : > { %v4293_v57 = vpop.eup %4292 }
 0x719   : > { %v2210_v6 = vadd.f32 1.0, %v4293_v57  ;;  %v4295_v12 = vpop.eup %4294  ;;  %v2562_v57 = vld [vmem:[#allocation2] sm:$0xff] (!%p2859_p12) }
 0x71a   : > { %v2217_v13 = vadd.f32 1.0, %v4295_v12  ;;  %2564 = vst [vmem:[#allocation18] sm:$0xff] (!%p2859_p12), %v2562_v57  ;;  %v2568_v12 = vld [vmem:[#allocation16 + $0x10] sm:$0xff] (!%p2859_p12) }
 0x71b   : > { %4296 = vrcp.f32 %v2210_v6  ;;  %v2566_v6 = vld [vmem:[#allocation16] sm:$0xff] (!%p2859_p12) }
 0x71c   : > { %4298 = vrcp.f32 %v2217_v13  ;;  %v2569_v13 = vld [vmem:[#allocation16 + $0x18] sm:$0xff] (!%p2859_p12) }
 0x725   : > { %v4297_v22 = vpop.eup %4296 }
 0x726   : > { %v2220_v50 = vmul.f32 %v4297_v22, %v2203_v11  ;;  %v4299_v40 = vpop.eup %4298  ;;  %v4660_v11 = vmov (!%p2859_p12), 0.0  }
 0x727   : > { %v2223_v53 = vsub.f32 1.0, %v4299_v40  ;;  %v2225_v38 = vmul.f32 %v4299_v40, %v5444_v45 }
 0x728   : > { %v2221_v31 = vadd.f32 %v2220_v50, %v1805_v27  ;;  %v4032_v27 = vpack.c.bf16 (!%p2859_p12), %v2569_v13, %v2568_v12  ;;  %v2570_v50 = vld [vmem:[#allocation16 + $0x20] sm:$0xff] (!%p2859_p12) }
 0x72a   : > { %4300 = vtanh.f32 %v2221_v31  ;;  %v2571_v31 = vld [vmem:[#allocation16 + $0x28] sm:$0xff] (!%p2859_p12) }
 0x72b   : > { %v4035_v40 = vpack.c.bf16 (!%p2859_p12), %v2571_v31, %v2570_v50 }
 0x734   : > { %v4301_v36 = vpop.eup %4300 }
 0x735   : > { %v2224_v47 = vmul.f32 %v4301_v36, %v2223_v53  ;;  %v2572_v53 = vld [vmem:[#allocation16 + $0x30] sm:$0xff] (!%p2859_p12)  ;;  %v2573_v36 = vld [vmem:[#allocation16 + $0x38] sm:$0xff] (!%p2859_p12) }
 0x737   : > { %v2226_v42 = vadd.f32 %v2225_v38, %v2224_v47  ;;  %v4038_v47 = vpack.c.bf16 (!%p2859_p12), %v2573_v36, %v2572_v53  ;;  %v2574_v38 = vld [vmem:[#allocation16 + $0x40] sm:$0xff] (!%p2859_p12) }
 0x739   : > { %2295 = vmatmul.mubr.f32.vlgmr.msra.gmra.mrb[12].mxu0 %v2226_v42  ;;  %3380 = vmatmul.mubr.f32.vlgmr.msra.gmra.mrb[20].mxu1 %v2226_v42 }
 0x73a   : > { %3975 = vmatpush1.bf16.msra.mxu0 %v5284_v10  ;;  %4006 = vmatpush3.bf16.msra.mxu1 %v5319_v54  ;;  %v1810_v54 = vadd.f32 %v5426_v41, %v5438_v44  ;;  %v2567_v44 = vld [vmem:[#allocation16 + $0x8] sm:$0xff] (!%p2859_p12) }
 0x73b   : > { %3977 = vmatprep.subr.bf16.mxu0 %v5288_v15  ;;  %4007 = vmatprep.subr.bf16.mxu1 %v4656_v43  ;;  %v4029_v22 = vpack.c.bf16 (!%p2859_p12), %v2567_v44, %v2566_v6 }
 0x73c   : > { %2459 = vmatprep.mubr.f32.mxu0 %v4655_v9  ;;  %3414 = vmatprep.mubr.msk.f32.mxu1 %vm4657_vm0, %v4655_v9 }
 0x73e   : > { %3979 = vmatpush1.bf16.msra.mxu0 %v5290_v24  ;;  %4009 = vmatpush3.bf16.msra.mxu1 %v5333_v4 }
 0x73f   : > { %3981 = vmatprep.subr.bf16.mxu0 %v5294_v20  ;;  %4010 = vmatprep.subr.bf16.mxu1 %v4656_v43 }
 0x742   : > { %3983 = vmatpush1.bf16.msra.mxu0 %v5296_v35  ;;  %4012 = vmatpush3.bf16.msra.mxu1 %v5339_v55 }
 0x743   : > { %3985 = vmatprep.subr.bf16.mxu0 %v5300_v46  ;;  %4013 = vmatprep.subr.bf16.mxu1 %v4656_v43 }
 0x746   : > { %3987 = vmatpush1.bf16.msra.mxu0 %v5302_v56  ;;  %4015 = vmatpush3.bf16.msra.mxu1 %v5342_v30 }
 0x747   : > { %3989 = vmatprep.subr.bf16.mxu0 %v5306_v2  ;;  %4016 = vmatprep.subr.bf16.mxu1 %v4656_v43 }
 0x74a   : > { %3991 = vmatpush1.bf16.msra.mxu0 %v5308_v16  ;;  %4018 = vmatpush3.bf16.msra.mxu1 %v5346_v29 }
 0x74b   : > { %3993 = vmatprep.subr.bf16.mxu0 %v5310_v21  ;;  %4019 = vmatprep.subr.bf16.mxu1 %v4656_v43 }
 0x74e   : > { %3995 = vmatpush1.bf16.msra.mxu0 %v5314_v32  ;;  %4021 = vmatpush3.bf16.msra.mxu1 %v5350_v28 }
 0x74f   : > { %3997 = vmatprep.subr.bf16.mxu0 %v5317_v39  ;;  %4022 = vmatprep.subr.bf16.mxu1 %v4656_v43 }
 0x752   : > { %3999 = vmatpush1.bf16.msra.mxu0 %v5323_v25  ;;  %4024 = vmatpush3.bf16.msra.mxu1 %v5354_v48 }
 0x753   : > { %4001 = vmatprep.subr.bf16.mxu0 %v5328_v58  ;;  %4025 = vmatprep.subr.bf16.mxu1 %v4656_v43 }
 0x756   : > { %4003 = vmatpush1.bf16.msra.mxu0 %v5330_v49  ;;  %4027 = vmatpush3.bf16.msra.mxu1 %v5358_v61 }
 0x757   : > { %4028 = vmatprep.subr.bf16.mxu0 (!%p2859_p12), %v4658_v19 }
 0x80c   : > { %v2296_v9 = vpop.f32.mrb[12].mxu0  ;;  %v2367_v10 = vpop.f32.mrb[20].mxu1 }
 0x80d   : > { %v4077_v15 = vadd.f32 %v5428_v52, %v2296_v9  ;;  %v2298_v24 = vpop.f32.mrb[13].mxu0  ;;  %v3381_v20 = vpop.f32.mrb[21].mxu1  ;;  %v2368_v32 = vadd.f32 %v2367_v10, %v5435_v33  ;;  %v2576_v10 = vld [vmem:[#allocation16 + $0x50] sm:$0xff] (!%p2859_p12) }
 0x80e   : > { %v4079_v46 = vadd.f32 %v5430_v1, %v2298_v24  ;;  %v2578_v20 = vld [vmem:[#allocation16 + $0x60] sm:$0xff] (!%p2859_p12) }
 0x80f   : > { %v2855_v35 = vmul.f32 -1.442695, %v4077_v15  ;;  %v2577_v15 = vld [vmem:[#allocation16 + $0x58] sm:$0xff] (!%p2859_p12) }
 0x810   : > { %v2856_v56 = vmul.f32 -1.442695, %v4079_v46  ;;  %v4044_v24 = vpack.c.bf16 (!%p2859_p12), %v2577_v15, %v2576_v10 }
 0x811   : > { %4302 = vpow2.f32 %v2855_v35  ;;  %v2579_v35 = vld [vmem:[#allocation16 + $0x68] sm:$0xff] (!%p2859_p12) }
 0x812   : > { %4304 = vpow2.f32 %v2856_v56  ;;  %v4047_v46 = vpack.c.bf16 (!%p2859_p12), %v2579_v35, %v2578_v20  ;;  %v2580_v56 = vld [vmem:[#allocation16 + $0x70] sm:$0xff] (!%p2859_p12) }
 0x81b   : > { %v4303_v2 = vpop.eup %4302 }
 0x81c   : > { %v2375_v16 = vadd.f32 1.0, %v4303_v2  ;;  %v4305_v43 = vpop.eup %4304  ;;  %v2581_v2 = vld [vmem:[#allocation16 + $0x78] sm:$0xff] (!%p2859_p12) }
 0x81d   : > { %v2382_v21 = vadd.f32 1.0, %v4305_v43  ;;  %v2860_v43 = vld [vmem:[%s5661_s23] ss:$0 sm:$0xff] (!%p2859_p12) }
 0x81e   : > { %4306 = vrcp.f32 %v2375_v16  ;;  %v4050_v16 = vpack.c.bf16 (!%p2859_p12), %v2581_v2, %v2580_v56 }
 0x81f   : > { %4308 = vrcp.f32 %v2382_v21 }
 0x828   : > { %v4307_v39 = vpop.eup %4306 }
 0x829   : > { %v2385_v25 = vmul.f32 %v4307_v39, %v2368_v32  ;;  %v4309_v49 = vpop.eup %4308 }
 0x82a   : > { %v2388_v4 = vsub.f32 1.0, %v4309_v49  ;;  %v2390_v29 = vmul.f32 %v4309_v49, %v2226_v42  ;;  %v2575_v42 = vld [vmem:[#allocation16 + $0x48] sm:$0xff] (!%p2859_p12) }
 0x82b   : > { %v2386_v58 = vadd.f32 %v2385_v25, %v1810_v54  ;;  %v4041_v9 = vpack.c.bf16 (!%p2859_p12), %v2575_v42, %v2574_v38 }
 0x82d   : > { %4310 = vtanh.f32 %v2386_v58 }
 0x837   : > { %v4311_v55 = vpop.eup %4310 }
 0x838   : > { %v2389_v30 = vmul.f32 %v4311_v55, %v2388_v4 }
 0x83a   : > { %v2391_v28 = vadd.f32 %v2390_v29, %v2389_v30 }
 0x83c   : > { %2460 = vmatmul.mubr.f32.vlgmr.msra.gmra.mrb[14].mxu0 %v2391_v28  ;;  %3415 = vmatmul.mubr.f32.vlgmr.msra.gmra.mrb[22].mxu1 %v2391_v28 }
 0x83d   : > { %3449 = vmatprep.mubr.msk.f32.mxu0 (!%p2859_p12), %vm4659_vm1, %v4660_v11  ;;  %4030 = vmatpush3.bf16.msra.mxu0 (!%p2859_p12), %v4029_v22 }
 0x83e   : > { %4031 = vmatprep.subr.bf16.mxu0 (!%p2859_p12), %v4658_v19 }
 0x841   : > { %4033 = vmatpush3.bf16.msra.mxu0 (!%p2859_p12), %v4032_v27 }
 0x842   : > { %4034 = vmatprep.subr.bf16.mxu0 (!%p2859_p12), %v4658_v19 }
 0x845   : > { %4036 = vmatpush3.bf16.msra.mxu0 (!%p2859_p12), %v4035_v40 }
 0x846   : > { %4037 = vmatprep.subr.bf16.mxu0 (!%p2859_p12), %v4658_v19 }
 0x849   : > { %4039 = vmatpush3.bf16.msra.mxu0 (!%p2859_p12), %v4038_v47 }
 0x84a   : > { %4040 = vmatprep.subr.bf16.mxu0 (!%p2859_p12), %v4658_v19 }
 0x84d   : > { %4042 = vmatpush3.bf16.msra.mxu0 (!%p2859_p12), %v4041_v9 }
 0x84e   : > { %4043 = vmatprep.subr.bf16.mxu0 (!%p2859_p12), %v4658_v19 }
 0x851   : > { %4045 = vmatpush3.bf16.msra.mxu0 (!%p2859_p12), %v4044_v24 }
 0x852   : > { %4046 = vmatprep.subr.bf16.mxu0 (!%p2859_p12), %v4658_v19 }
 0x855   : > { %4048 = vmatpush3.bf16.msra.mxu0 (!%p2859_p12), %v4047_v46 }
 0x856   : > { %4049 = vmatprep.subr.bf16.mxu0 (!%p2859_p12), %v4658_v19 }
 0x859   : > { %4051 = vmatpush3.bf16.msra.mxu0 (!%p2859_p12), %v4050_v16 }
 0x90f   : > { %v2461_v48 = vpop.f32.mrb[14].mxu0  ;;  %v2532_v61 = vpop.f32.mrb[22].mxu1 }
 0x910   : > { %v4081_v62 = vadd.f32 %v5428_v52, %v2461_v48  ;;  %v2463_v59 = vpop.f32.mrb[15].mxu0  ;;  %v3416_v60 = vpop.f32.mrb[23].mxu1  ;;  %v2533_v45 = vadd.f32 %v2532_v61, %v5435_v33 }
 0x911   : > { %v4083_v41 = vadd.f32 %v5430_v1, %v2463_v59 }
 0x912   : > { %v2857_v63 = vmul.f32 -1.442695, %v4081_v62 }
 0x913   : > { %v2858_v3 = vmul.f32 -1.442695, %v4083_v41 }
 0x914   : > { %4312 = vpow2.f32 %v2857_v63 }
 0x915   : > { %4314 = vpow2.f32 %v2858_v3 }
 0x91e   : > { %v4313_v5 = vpop.eup %4312 }
 0x91f   : > { %v2540_v7 = vadd.f32 1.0, %v4313_v5  ;;  %v4315_v8 = vpop.eup %4314 }
 0x920   : > { %v2547_v14 = vadd.f32 1.0, %v4315_v8 }
 0x921   : > { %4316 = vrcp.f32 %v2540_v7 }
 0x922   : > { %4318 = vrcp.f32 %v2547_v14 }
 0x92b   : > { %v4317_v34 = vpop.eup %4316 }
 0x92c   : > { %v2550_v52 = vmul.f32 %v4317_v34, %v2533_v45  ;;  %v4319_v51 = vpop.eup %4318 }
 0x92d   : > { %v2553_v1 = vsub.f32 1.0, %v4319_v51  ;;  %v2555_v26 = vmul.f32 %v4319_v51, %v2391_v28 }
 0x92e   : > { %v2551_v17 = vadd.f32 %v2550_v52, %v1815_v0 }
 0x930   : > { %4320 = vtanh.f32 %v2551_v17 }
 0x939   : > { %2561 = sbr.rel (%p2859_p12) target bundleno = 2582 (0xa16), region = 104 }
 0x93a   : > { %v4321_v18 = vpop.eup %4320 }
 0x93b   : > { %v2554_v23 = vmul.f32 %v4321_v18, %v2553_v1 }
 0x93d   : > { %v2556_v37 = vadd.f32 %v2555_v26, %v2554_v23 }
 0x93f   : > { %2557 = vst [vmem:[#allocation2 + $0x8] sm:$0xff] %v2556_v37  ;;  %3450 = vmatmul.mubr.f32.vlgmr.msra.gmra.mrb[0].mxu0 (!%p2859_p12), %v2556_v37 }
 0x946   : > { %v2563_v33 = vld [vmem:[#allocation2 + $0x8] sm:$0xff] }
 0x947   : > { %2565 = vst [vmem:[#allocation18 + $0x8] sm:$0xff] %v2563_v33 }
 0xa12   : > { %v2655_v21 = vpop.f32.mrb[0].mxu0 }
 0xa13   : > { %v2656_v32 = vadd.f32 %v2860_v43, %v2655_v21  ;;  %v3451_v39 = vpop.f32.mrb[1].mxu0 }
 0xa15   : > { %2659 = vst [vmem:[#allocation17] sm:$0xff] %v2656_v32 }
 0xa16 PF: > { %s5662_s25 = sadd.s32 4294967295, %s4642_s30   ;;  %s4661_s15 = smov [#allocation17]  }
 0xa17   : > { %p5538_p6 = scmp.eq.s32.totalorder %s5662_s25, 1  ;;  %s2669_s9 = sshll.u32 %s4661_s15, 4  ;;  %s2670_s9 = int_to_ptr.vmem [resolvable:$true] %s2669_s9 }
 0xa18   : > { %s4662_s22 = smov [#allocation18]   ;;  %s4520_s18 = scalar_lea.vmem %s2670_s9, 128 }
 0xa19   : > { %s2681_s13 = sshll.u32 %s4662_s22, 4  ;;  %p4521_p8 = scmp.ne.s32.totalorder %s2670_s9, %s4520_s18  ;;  %s5542_s13 = int_to_ptr.vmem [resolvable:$true] %s2681_s13 }
 0xa1a   : > { %p4527_p11 = scmp.lt.s32.totalorder %s2670_s9, %s2670_s9  ;;  %p4528_p13 = scmp.lt.s32.totalorder %s4520_s18, %s4520_s18 }
 0xa1b   : > { %p4522_p9 = pnand %p4521_p8, %p5538_p6 }
 0xa1c   : > { %p4529_p2 = por %p4528_p13, %p4527_p11 }
 0xa1d   : > { %p4523_p5 = pneg %p4522_p9 }
 0xa1f   : > { %p4530_p7 = pnand %p4529_p2, %p4523_p5 }
 0xa21   : > { %4533 = shalt.err (!%p4530_p7)
}
 0xa22   : > { %s5664_s11 = sld [smem:[#allocation32_spill]] }
 0xa28   : > { %s4534_s24 = scalar_lea.hbm %s5664_s11, 128 }
 0xa29   : > { %p4535_p1 = scmp.ne.s32.totalorder %s5664_s11, %s4534_s24  ;;  %p4540_p4 = scmp.lt.u32.totalorder %s4534_s24, %s5664_s11 }
 0xa2b   : > { %p4536_p3 = pnand %p4535_p1, %p5538_p6 }
 0xa2d   : > { %p4537_p0 = pneg %p4536_p3 }
 0xa2f   : > { %p4542_p10 = pnand %p4540_p4, %p4537_p0 }
 0xa31   : > { %4545 = shalt.err (!%p4542_p10)
}
 0xa32   : > { %4127 = dma.vmem_to_hbm [thread:$0]  (%p5538_p6), %s2670_s9, 128, %s5664_s11, [#allocation7]  }
 0xa33   : > { %s4546_s23 = scalar_lea.vmem %s5542_s13, 256  ;;  %p4553_p5 = scmp.lt.s32.totalorder %s5542_s13, %s5542_s13 }
 0xa34   : > { %p4547_p12 = scmp.ne.s32.totalorder %s5542_s13, %s4546_s23  ;;  %p4554_p11 = scmp.lt.s32.totalorder %s4546_s23, %s4546_s23 }
 0xa36   : > { %p4548_p8 = pnand %p4547_p12, %p5538_p6  ;;  %p4555_p13 = por %p4554_p11, %p4553_p5 }
 0xa38   : > { %p4549_p9 = pneg %p4548_p8 }
 0xa3a   : > { %p4556_p2 = pnand %p4555_p13, %p4549_p9 }
 0xa3c   : > { %4559 = shalt.err (!%p4556_p2)
}
 0xa3d   : > { %s5665_s22 = sld [smem:[#allocation33_spill]] }
 0xa43   : > { %s4560_s18 = scalar_lea.hbm %s5665_s22, 256 }
 0xa44   : > { %p4561_p7 = scmp.ne.s32.totalorder %s5665_s22, %s4560_s18  ;;  %p4566_p0 = scmp.lt.u32.totalorder %s4560_s18, %s5665_s22 }
 0xa46   : > { %p4562_p1 = pnand %p4561_p7, %p5538_p6 }
 0xa48   : > { %p4563_p3 = pneg %p4562_p1 }
 0xa4a   : > { %p4568_p4 = pnand %p4566_p0, %p4563_p3 }
 0xa4c   : > { %4571 = shalt.err (!%p4568_p4)
}
 0xa4d   : > { %s4663_s8 = smov 128   ;;  %s4664_s20 = smov 8  }
 0xa4e   : > { %4129 = dma.vmem_to_hbm [thread:$0]  (%p5538_p6), %s5542_s13, 256, %s5665_s22, [#allocation19], %s4663_s8, %s4663_s8, %s4664_s20  }
 0xa4f   : > { %4613 = dma.done.wait (%p5538_p6), [#allocation7], 128  }
 0xa50   : > { %4615 = vsyncadd (%p5538_p6), [#allocation7], 4294967168 }
 0xa51   : > { %4617 = dma.done.wait (%p5538_p6), [#allocation19], 256  }
 0xa52   : > { %4619 = vsyncadd (%p5538_p6), [#allocation19], 4294967040 }
 0xa53 PF: > { %s32_s30 = sadd.s32 1, %s4642_s30   ;;  %s5666_s25 = smov %s4626_s26 }
 0xa54   : > { %p29_p10 = scmp.ge.s32.totalorder %s32_s30, 4   ;;  %s5667_s26 = smov %s4630_s27 }
 0xa55   : > { %s5668_s27 = smov %s4942_s12  ;;  %s5669_s28 = smov %s4638_s29 }
 0xa56   : > { %s5670_s29 = smov %s5672_s19  ;;  %31 = sbr.rel (!%p29_p10) target bundleno = 17 (0x11), region = 156 }
 0xa5d   :  { %2701 = vsyncpa [#allocation6], 1 }
 0xa5e   :  { %2703 = vsyncpa [#allocation6 + $0x1], 1 }
 0xa5f   :  { %2704 = vsyncpa [#allocation9], 1 }
 0xa60   :  { %2705 = vsyncpa [#allocation12], 1 }
 0xa61   :  { %2706 = vsyncpa [#allocation15], 1 }
 0xa62   :  { %2707 = vsyncpa [#allocation7], 1 }
 0xa63   :  { %2709 = vsyncpa [#allocation7 + $0x1], 1 }
 0xa64   :  { %2710 = vsyncpa [#allocation19], 1 }

</bundles_post_ra>
